<compile_context>
chip_gen: v5e
topology: v5e:2x2
jax: 0.10.0
libtpu: 0.0.40
codegen_flags: <defaults>
</compile_context>

<pallas_src>
import functools

import jax
import jax.numpy as jnp
from jax.experimental import pallas as pl
from jax.experimental.pallas import tpu as pltpu

HIDDEN = 128  # Spatio_Block internal width (fixed to 128 in the PyTorch code)

# bf16 matmul operands: ~2x MXU throughput on v6e/v7x and half the weight DMA;
# accumulation stays f32 (preferred_element_type), biases/residual stay f32.
MATMUL_DTYPE = jnp.bfloat16


def _vmem_limit_bytes():
    """Explicit scoped-VMEM budget (defaults: 16 MiB v5e / 32 MiB v6e,v7x are
    too small for large lane-dense blocks); keep headroom below physical."""
    try:
        cap = pltpu.get_tpu_info().vmem_capacity_bytes
        if not cap or cap <= 0:
            cap = 64 * 1024 * 1024
    except Exception:  # pragma: no cover - older runtimes / query failure
        cap = 64 * 1024 * 1024
    return int(min(48 * 1024 * 1024, (cap * 3) // 4))


_VMEM_LIMIT = _vmem_limit_bytes()


# ---------------------------------------------------------------------------
# Kernel: one Temporal_and_Spatio_Block on a (C, B*L) lane-dense batch block.
# ---------------------------------------------------------------------------
def _ts_block_kernel(x_ref, tidx_ref, wflat_ref, bconv_ref, A_ref, T_ref,
                     bias_ref, out_ref, *, shifts, L, C, B):
    BL = B * L
    x = x_ref[...]                                   # (C, BL) float32
    xm = x.astype(MATMUL_DTYPE)

    # ---- temporal path: dilated causal Conv1d + Chomp1d + ReLU -------------
    # Tap with shift s reads x[:, t - s]; taps with s >= L were pruned in the
    # wrapper (identically zero).  All active taps are stacked on sublanes and
    # contracted in ONE MXU matmul against the lane-dense (C, kt*C) weight.
    taps = []
    for s in shifts:                                 # static unroll over taps
        if s == 0:
            taps.append(xm)
        else:
            shifted = jnp.concatenate(
                [jnp.zeros((C, s), xm.dtype), xm[:, :BL - s]], axis=1)
            if B > 1:
                # zero the causal pad of samples b >= 1 (no bleed across the
                # sample seams of the fused batch*time lane axis)
                shifted = jnp.where(tidx_ref[...] >= s, shifted,
                                    jnp.zeros_like(shifted))
            taps.append(shifted)
    stacked = taps[0] if len(taps) == 1 else jnp.concatenate(taps, axis=0)
    y1 = jnp.dot(wflat_ref[...], stacked, preferred_element_type=jnp.float32)
    y1 = jnp.maximum(y1 + bconv_ref[...], 0.0)       # dropout1: identity (eval)

    # ---- spatio path (algebraically folded linear chain) -------------------
    # y2 = relu(A @ x @ T + bias_eff); T is applied per sample (static unroll
    # over the B samples of the block) -> zero wasted MXU FLOPs, no (BL,BL)
    # block-diagonal constant.
    xc = jnp.dot(A_ref[...], xm, preferred_element_type=jnp.float32)  # (C, BL)
    xcm = xc.astype(MATMUL_DTYPE)
    T = T_ref[...]
    bias = bias_ref[...]                             # (C, L) f32
    parts = []
    for b in range(B):                               # static unroll
        xs = xcm[:, b * L:(b + 1) * L]               # (C, L) static slice
        parts.append(jnp.dot(xs, T, preferred_element_type=jnp.float32) + bias)
    y2 = parts[0] if B == 1 else jnp.concatenate(parts, axis=1)
    y2 = jnp.maximum(y2, 0.0)

    # ---- residual combine: single fused VPU pass, single lane-dense store --
    out_ref[...] = jnp.maximum(x + y1 + y2, 0.0)


# ---------------------------------------------------------------------------
# Wrapper-side helpers
# ---------------------------------------------------------------------------
def _pick_batch_block(N, L, max_lanes=8192, min_grid_steps=2):
    """Batch-block size B.  The (C, B*L) block must be 128-lane aligned or
    full-extent; pick the largest such B whose B*L fits the lane budget
    (bigger blocks amortize per-grid-step overhead and keep stores
    lane-dense), but prefer >= min_grid_steps grid steps so both v7x
    TensorCores get work under dimension_semantics=("parallel",)."""
    divisors = [b for b in range(1, N + 1) if N % b == 0]
    legal = [b for b in divisors if b == N or (b * L) % 128 == 0]
    fitting = [b for b in legal if b * L <= max_lanes] or [min(legal)]
    split = [b for b in fitting if N // b >= min_grid_steps]
    return max(split) if split else max(fitting)


def prepare_block_params(params, *, k, d, L):
    """Per-level preprocessing (done once in the wrapper, under jit):
      * prune identically-zero conv taps ((k-1-j)*d >= L) and build the
        lane-dense tap-major conv weight (C, kt*C),
      * algebraically fold the (fully linear) spatio chain
        conv1x1 -> Linear -> conv1x1 -> Linear into y2 = relu(A x T + bias),
      * cast matmul operands to MATMUL_DTYPE once (biases stay f32)."""
    wconv, bconv, wa, ba, wc, bc, we, be, wf, bf = params
    C = wconv.shape[0]
    k_ = wconv.shape[2]
    assert k_ == k
    active = [j for j in range(k) if (k - 1 - j) * d < L]
    shifts = tuple((k - 1 - j) * d for j in active)
    wflat = jnp.concatenate([wconv[:, :, j] for j in active], axis=1)  # (C,kt*C)
    bconv_col = bconv[:, None]                                         # (C, 1)
    # spatio fold: y2 = relu(A x T + bias_eff), exact (chain has no nonlinearity)
    A = we @ wa                                                        # (C, C)
    T = wc.T @ wf.T                                                    # (L, L)
    bias_eff = (jnp.outer(we @ ba, T.sum(axis=0))
                + jnp.outer(we.sum(axis=1), wf @ bc)
                + jnp.outer(be, wf.sum(axis=1))
                + bf[None, :])                                         # (C, L)
    prep = (wflat.astype(MATMUL_DTYPE),
            bconv_col.astype(jnp.float32),
            A.astype(MATMUL_DTYPE),
            T.astype(MATMUL_DTYPE),
            bias_eff.astype(jnp.float32))
    return prep, shifts


def ts_block_apply(xt, tidx, prep, *, shifts, N, C, L, B):
    """Apply one Temporal_and_Spatio_Block to the lane-dense (C, N*L) slab."""
    BL = B * L
    consts = (tidx,) + tuple(prep)

    def const_spec(a):
        # full-extent constant operands (all tiny now that Tblk / tiled bias
        # are gone), re-used unchanged by every grid step
        return pl.BlockSpec(a.shape, lambda nb, _nd=a.ndim: (0,) * _nd)

    kernel = functools.partial(_ts_block_kernel, shifts=shifts, L=L, C=C, B=B)
    return pl.pallas_call(
        kernel,
        out_shape=jax.ShapeDtypeStruct((C, N * L), xt.dtype),
        grid_spec=pltpu.PrefetchScalarGridSpec(
            num_scalar_prefetch=0,
            grid=(N // B,),
            in_specs=[pl.BlockSpec((C, BL), lambda nb: (0, nb))]
                     + [const_spec(a) for a in consts],
            out_specs=pl.BlockSpec((C, BL), lambda nb: (0, nb)),
        ),
        # update the activation slab in place across levels
        input_output_aliases={0: 0},
        compiler_params=pltpu.CompilerParams(
            # each batch block writes a distinct output block -> parallel
            dimension_semantics=("parallel",),
            vmem_limit_bytes=_VMEM_LIMIT),
    )(xt, *consts)


def temporal_and_spatio_convnet(x, layer_params, *, kernel_size):
    """x: (N, C, L) -> (N, C, L), stacking levels with dilation 2**i."""
    N, C, L = x.shape
    B = _pick_batch_block(N, L)
    # one layout change for the whole stack: (N, C, L) -> lane-dense (C, N*L)
    xt = jnp.transpose(x, (1, 0, 2)).reshape(C, N * L).astype(jnp.float32)
    # per-lane time index within a sample (only used when B > 1)
    tidx = jnp.tile(jnp.arange(L, dtype=jnp.int32), B).reshape(1, B * L)
    for i, params in enumerate(layer_params):
        prep, shifts = prepare_block_params(params, k=kernel_size, d=2 ** i, L=L)
        xt = ts_block_apply(xt, tidx, prep, shifts=shifts, N=N, C=C, L=L, B=B)
    return jnp.transpose(xt.reshape(C, N, L), (1, 0, 2))


# ---------------------------------------------------------------------------
# Parameter init (synthetic effective weights; weight_norm folded away)
# ---------------------------------------------------------------------------
def init_params(key, C, L, k, num_levels):
    layers = []
    std = 0.01
    for i in range(num_levels):
        keys = jax.random.split(jax.random.fold_in(key, i), 10)
        wconv = std * jax.random.normal(keys[0], (C, C, k), jnp.float32)
        bconv = std * jax.random.normal(keys[1], (C,), jnp.float32)
        wa = std * jax.random.normal(keys[2], (HIDDEN, C), jnp.float32)
        ba = std * jax.random.normal(keys[3], (HIDDEN,), jnp.float32)
        wc = std * jax.random.normal(keys[4], (HIDDEN, L), jnp.float32)
        bc = std * jax.random.normal(keys[5], (HIDDEN,), jnp.float32)
        we = std * jax.random.normal(keys[6], (C, HIDDEN), jnp.float32)
        be = std * jax.random.normal(keys[7], (C,), jnp.float32)
        wf = std * jax.random.normal(keys[8], (L, HIDDEN), jnp.float32)
        bf = std * jax.random.normal(keys[9], (L,), jnp.float32)
        layers.append((wconv, bconv, wa, ba, wc, bc, we, be, wf, bf))
    return layers


# ----------------------- pure-JAX reference (unfolded) ----------------------
def _ref_block(x, params, k, d):
    wconv, bconv, wa, ba, wc, bc, we, be, wf, bf = params
    N, C, L = x.shape
    p = (k - 1) * d
    xpad = jnp.pad(x, ((0, 0), (0, 0), (p, 0)))
    y1 = sum(jnp.einsum('oc,ncl->nol', wconv[:, :, j],
                        xpad[:, :, j * d: j * d + L]) for j in range(k))
    y1 = jnp.maximum(y1 + bconv[None, :, None], 0.0)
    h1 = jnp.einsum('mc,ncl->nml', wa, x) + ba[None, :, None]
    h2 = jnp.einsum('nml,jl->nmj', h1, wc) + bc[None, None, :]
    h3 = jnp.einsum('cm,nmj->ncj', we, h2) + be[None, :, None]
    h4 = jnp.einsum('ncj,lj->ncl', h3, wf) + bf[None, None, :]
    y2 = jnp.maximum(h4, 0.0)
    return jnp.maximum(x + y1 + y2, 0.0)


if __name__ == "__main__":
    key = jax.random.PRNGKey(0)
    N, C, L, k = 2, 4, 16, 3
    # dilations 1,2,4,8,16: the two deepest levels exercise zero-tap pruning;
    # residual add requires out_channels == in_channels -> num_channels=[C]*5
    num_levels = 5

    x = jax.random.normal(jax.random.fold_in(key, 123), (N, C, L), jnp.float32)
    params = init_params(key, C, L, k, num_levels)

    fwd = jax.jit(lambda xx, pp: temporal_and_spatio_convnet(
        xx, pp, kernel_size=k))
    y = jax.block_until_ready(fwd(x, params))

    # sanity check against the (unfolded) pure-JAX f32 reference
    y_ref = x
    for i, pr in enumerate(params):
        y_ref = _ref_block(y_ref, pr, k, 2 ** i)
    tol = 1e-4 if MATMUL_DTYPE == jnp.float32 else 1e-2
    assert y.shape == y_ref.shape
    assert jnp.allclose(y, y_ref, atol=tol, rtol=tol), "mismatch vs reference"

    print("KERNEL_OK")
</pallas_src>

<mosaic_0001>
module attributes {stable_mosaic.version = 11 : i64} {
  func.func @_ts_block_kernel(%arg0: i32, %arg1: memref<4x32xf32, #tpu.memory_space<vmem>>, %arg2: memref<1x32xi32, #tpu.memory_space<vmem>>, %arg3: memref<4x12xbf16, #tpu.memory_space<vmem>>, %arg4: memref<4x1xf32, #tpu.memory_space<vmem>>, %arg5: memref<4x4xbf16, #tpu.memory_space<vmem>>, %arg6: memref<16x16xbf16, #tpu.memory_space<vmem>>, %arg7: memref<4x16xf32, #tpu.memory_space<vmem>>, %arg8: memref<4x32xf32, #tpu.memory_space<vmem>>) attributes {dimension_semantics = [#tpu.dimension_semantics<parallel>], iteration_bounds = array<i64: 1>, scalar_prefetch = 0 : i64, scratch_operands = 0 : i64, tpu.core_type = #tpu.core_type<tc>, window_params = [{transform_indices = @transform_0, window_bounds = array<i64: 4, 32>}, {pipeline_mode = #tpu.pipeline_mode<synchronous>, transform_indices = @transform_1, window_bounds = array<i64: 1, 32>}, {pipeline_mode = #tpu.pipeline_mode<synchronous>, transform_indices = @transform_2, window_bounds = array<i64: 4, 12>}, {pipeline_mode = #tpu.pipeline_mode<synchronous>, transform_indices = @transform_3, window_bounds = array<i64: 4, 1>}, {pipeline_mode = #tpu.pipeline_mode<synchronous>, transform_indices = @transform_4, window_bounds = array<i64: 4, 4>}, {pipeline_mode = #tpu.pipeline_mode<synchronous>, transform_indices = @transform_5, window_bounds = array<i64: 16, 16>}, {pipeline_mode = #tpu.pipeline_mode<synchronous>, transform_indices = @transform_6, window_bounds = array<i64: 4, 16>}, {transform_indices = @transform_7, window_bounds = array<i64: 4, 32>}]} {
    %c0 = arith.constant 0 : index
    %c0_0 = arith.constant 0 : index
    %0 = vector.load %arg1[%c0, %c0_0] : memref<4x32xf32, #tpu.memory_space<vmem>>, vector<4x32xf32>
    %1 = arith.truncf %0 : vector<4x32xf32> to vector<4x32xbf16>
    %cst = arith.constant 0.000000e+00 : bf16
    %2 = vector.broadcast %cst : bf16 to vector<4x4xbf16>
    %3 = vector.extract_strided_slice %1 {offsets = [0, 0], sizes = [4, 28], strides = [1, 1]} : vector<4x32xbf16> to vector<4x28xbf16>
    %4 = tpu.concatenate %2, %3 in 1 : vector<4x4xbf16>, vector<4x28xbf16> -> vector<4x32xbf16>
    %c0_1 = arith.constant 0 : index
    %c0_2 = arith.constant 0 : index
    %5 = vector.load %arg2[%c0_1, %c0_2] : memref<1x32xi32, #tpu.memory_space<vmem>>, vector<1x32xi32>
    %c4_i32 = arith.constant 4 : i32
    %6 = vector.broadcast %c4_i32 : i32 to vector<1x32xi32>
    %7 = arith.cmpi sge, %5, %6 : vector<1x32xi32>
    %cst_3 = arith.constant 0.000000e+00 : bf16
    %8 = vector.broadcast %cst_3 : bf16 to vector<4x32xbf16>
    %9 = vector.shape_cast %7 : vector<1x32xi1> to vector<1x32xi1>
    %10 = vector.broadcast %9 : vector<1x32xi1> to vector<4x32xi1>
    %11 = arith.select %10, %4, %8 : vector<4x32xi1>, vector<4x32xbf16>
    %cst_4 = arith.constant 0.000000e+00 : bf16
    %12 = vector.broadcast %cst_4 : bf16 to vector<4x2xbf16>
    %13 = vector.extract_strided_slice %1 {offsets = [0, 0], sizes = [4, 30], strides = [1, 1]} : vector<4x32xbf16> to vector<4x30xbf16>
    %14 = tpu.concatenate %12, %13 in 1 : vector<4x2xbf16>, vector<4x30xbf16> -> vector<4x32xbf16>
    %c0_5 = arith.constant 0 : index
    %c0_6 = arith.constant 0 : index
    %15 = vector.load %arg2[%c0_5, %c0_6] : memref<1x32xi32, #tpu.memory_space<vmem>>, vector<1x32xi32>
    %c2_i32 = arith.constant 2 : i32
    %16 = vector.broadcast %c2_i32 : i32 to vector<1x32xi32>
    %17 = arith.cmpi sge, %15, %16 : vector<1x32xi32>
    %cst_7 = arith.constant 0.000000e+00 : bf16
    %18 = vector.broadcast %cst_7 : bf16 to vector<4x32xbf16>
    %19 = vector.shape_cast %17 : vector<1x32xi1> to vector<1x32xi1>
    %20 = vector.broadcast %19 : vector<1x32xi1> to vector<4x32xi1>
    %21 = arith.select %20, %14, %18 : vector<4x32xi1>, vector<4x32xbf16>
    %22 = tpu.concatenate %11, %21, %1 in 0 : vector<4x32xbf16>, vector<4x32xbf16>, vector<4x32xbf16> -> vector<12x32xbf16>
    %c0_8 = arith.constant 0 : index
    %c0_9 = arith.constant 0 : index
    %23 = vector.load %arg3[%c0_8, %c0_9] : memref<4x12xbf16, #tpu.memory_space<vmem>>, vector<4x12xbf16>
    %cst_10 = arith.constant dense<0.000000e+00> : vector<4x32xf32>
    %24 = tpu.matmul %23, %22, %cst_10 {dimension_numbers = #tpu.dot_dimension_numbers<[1], [0], [0], [1], [0, 0, 1, 1], [], []>} : vector<4x12xbf16>, vector<12x32xbf16>, vector<4x32xf32> -> vector<4x32xf32>
    %c0_11 = arith.constant 0 : index
    %c0_12 = arith.constant 0 : index
    %25 = vector.load %arg4[%c0_11, %c0_12] : memref<4x1xf32, #tpu.memory_space<vmem>>, vector<4x1xf32>
    %26 = vector.broadcast %25 : vector<4x1xf32> to vector<4x32xf32>
    %27 = arith.addf %24, %26 : vector<4x32xf32>
    %cst_13 = arith.constant 0.000000e+00 : f32
    %28 = vector.broadcast %cst_13 : f32 to vector<4x32xf32>
    %29 = arith.maximumf %27, %28 : vector<4x32xf32>
    %c0_14 = arith.constant 0 : index
    %c0_15 = arith.constant 0 : index
    %30 = vector.load %arg5[%c0_14, %c0_15] : memref<4x4xbf16, #tpu.memory_space<vmem>>, vector<4x4xbf16>
    %cst_16 = arith.constant dense<0.000000e+00> : vector<4x32xf32>
    %31 = tpu.matmul %30, %1, %cst_16 {dimension_numbers = #tpu.dot_dimension_numbers<[1], [0], [0], [1], [0, 0, 1, 1], [], []>} : vector<4x4xbf16>, vector<4x32xbf16>, vector<4x32xf32> -> vector<4x32xf32>
    %32 = arith.truncf %31 : vector<4x32xf32> to vector<4x32xbf16>
    %c0_17 = arith.constant 0 : index
    %c0_18 = arith.constant 0 : index
    %33 = vector.load %arg6[%c0_17, %c0_18] : memref<16x16xbf16, #tpu.memory_space<vmem>>, vector<16x16xbf16>
    %c0_19 = arith.constant 0 : index
    %c0_20 = arith.constant 0 : index
    %34 = vector.load %arg7[%c0_19, %c0_20] : memref<4x16xf32, #tpu.memory_space<vmem>>, vector<4x16xf32>
    %35 = vector.extract_strided_slice %32 {offsets = [0, 0], sizes = [4, 16], strides = [1, 1]} : vector<4x32xbf16> to vector<4x16xbf16>
    %cst_21 = arith.constant dense<0.000000e+00> : vector<4x16xf32>
    %36 = tpu.matmul %35, %33, %cst_21 {dimension_numbers = #tpu.dot_dimension_numbers<[1], [0], [0], [1], [0, 0, 1, 1], [], []>} : vector<4x16xbf16>, vector<16x16xbf16>, vector<4x16xf32> -> vector<4x16xf32>
    %37 = arith.addf %36, %34 : vector<4x16xf32>
    %38 = vector.extract_strided_slice %32 {offsets = [0, 16], sizes = [4, 16], strides = [1, 1]} : vector<4x32xbf16> to vector<4x16xbf16>
    %cst_22 = arith.constant dense<0.000000e+00> : vector<4x16xf32>
    %39 = tpu.matmul %38, %33, %cst_22 {dimension_numbers = #tpu.dot_dimension_numbers<[1], [0], [0], [1], [0, 0, 1, 1], [], []>} : vector<4x16xbf16>, vector<16x16xbf16>, vector<4x16xf32> -> vector<4x16xf32>
    %40 = arith.addf %39, %34 : vector<4x16xf32>
    %41 = tpu.concatenate %37, %40 in 1 : vector<4x16xf32>, vector<4x16xf32> -> vector<4x32xf32>
    %cst_23 = arith.constant 0.000000e+00 : f32
    %42 = vector.broadcast %cst_23 : f32 to vector<4x32xf32>
    %43 = arith.maximumf %41, %42 : vector<4x32xf32>
    %44 = arith.addf %0, %29 : vector<4x32xf32>
    %45 = arith.addf %44, %43 : vector<4x32xf32>
    %cst_24 = arith.constant 0.000000e+00 : f32
    %46 = vector.broadcast %cst_24 : f32 to vector<4x32xf32>
    %47 = arith.maximumf %45, %46 : vector<4x32xf32>
    %c0_25 = arith.constant 0 : index
    %c0_26 = arith.constant 0 : index
    %48 = vector.load %arg8[%c0_25, %c0_26] : memref<4x32xf32, #tpu.memory_space<vmem>>, vector<4x32xf32>
    tpu.vector_store %arg8[%c0_25, %c0_26], %47 {strides = array<i32>} : memref<4x32xf32, #tpu.memory_space<vmem>>, vector<4x32xf32>,
    return
  }
  func.func @transform_0(%arg0: i32) -> (i32, i32) {
    %c0_i32 = arith.constant 0 : i32
    %c0_i32_0 = arith.constant 0 : i32
    return %c0_i32, %arg0 : i32, i32
  }
  func.func @transform_1(%arg0: i32) -> (i32, i32) {
    %c0_i32 = arith.constant 0 : i32
    %c0_i32_0 = arith.constant 0 : i32
    %c0_i32_1 = arith.constant 0 : i32
    return %c0_i32, %c0_i32_0 : i32, i32
  }
  func.func @transform_2(%arg0: i32) -> (i32, i32) {
    %c0_i32 = arith.constant 0 : i32
    %c0_i32_0 = arith.constant 0 : i32
    %c0_i32_1 = arith.constant 0 : i32
    return %c0_i32, %c0_i32_0 : i32, i32
  }
  func.func @transform_3(%arg0: i32) -> (i32, i32) {
    %c0_i32 = arith.constant 0 : i32
    %c0_i32_0 = arith.constant 0 : i32
    %c0_i32_1 = arith.constant 0 : i32
    return %c0_i32, %c0_i32_0 : i32, i32
  }
  func.func @transform_4(%arg0: i32) -> (i32, i32) {
    %c0_i32 = arith.constant 0 : i32
    %c0_i32_0 = arith.constant 0 : i32
    %c0_i32_1 = arith.constant 0 : i32
    return %c0_i32, %c0_i32_0 : i32, i32
  }
  func.func @transform_5(%arg0: i32) -> (i32, i32) {
    %c0_i32 = arith.constant 0 : i32
    %c0_i32_0 = arith.constant 0 : i32
    %c0_i32_1 = arith.constant 0 : i32
    return %c0_i32, %c0_i32_0 : i32, i32
  }
  func.func @transform_6(%arg0: i32) -> (i32, i32) {
    %c0_i32 = arith.constant 0 : i32
    %c0_i32_0 = arith.constant 0 : i32
    %c0_i32_1 = arith.constant 0 : i32
    return %c0_i32, %c0_i32_0 : i32, i32
  }
  func.func @transform_7(%arg0: i32) -> (i32, i32) {
    %c0_i32 = arith.constant 0 : i32
    %c0_i32_0 = arith.constant 0 : i32
    return %c0_i32, %arg0 : i32, i32
  }
}

module attributes {stable_mosaic.version = 11 : i64} {
  func.func @_ts_block_kernel(%arg0: i32, %arg1: memref<4x32xf32, #tpu.memory_space<vmem>>, %arg2: memref<1x32xi32, #tpu.memory_space<vmem>>, %arg3: memref<4x12xbf16, #tpu.memory_space<vmem>>, %arg4: memref<4x1xf32, #tpu.memory_space<vmem>>, %arg5: memref<4x4xbf16, #tpu.memory_space<vmem>>, %arg6: memref<16x16xbf16, #tpu.memory_space<vmem>>, %arg7: memref<4x16xf32, #tpu.memory_space<vmem>>, %arg8: memref<4x32xf32, #tpu.memory_space<vmem>>) attributes {dimension_semantics = [#tpu.dimension_semantics<parallel>], iteration_bounds = array<i64: 1>, scalar_prefetch = 0 : i64, scratch_operands = 0 : i64, tpu.core_type = #tpu.core_type<tc>, window_params = [{transform_indices = @transform_0, window_bounds = array<i64: 4, 32>}, {pipeline_mode = #tpu.pipeline_mode<synchronous>, transform_indices = @transform_1, window_bounds = array<i64: 1, 32>}, {pipeline_mode = #tpu.pipeline_mode<synchronous>, transform_indices = @transform_2, window_bounds = array<i64: 4, 12>}, {pipeline_mode = #tpu.pipeline_mode<synchronous>, transform_indices = @transform_3, window_bounds = array<i64: 4, 1>}, {pipeline_mode = #tpu.pipeline_mode<synchronous>, transform_indices = @transform_4, window_bounds = array<i64: 4, 4>}, {pipeline_mode = #tpu.pipeline_mode<synchronous>, transform_indices = @transform_5, window_bounds = array<i64: 16, 16>}, {pipeline_mode = #tpu.pipeline_mode<synchronous>, transform_indices = @transform_6, window_bounds = array<i64: 4, 16>}, {transform_indices = @transform_7, window_bounds = array<i64: 4, 32>}]} {
    %c0 = arith.constant 0 : index
    %c0_0 = arith.constant 0 : index
    %0 = vector.load %arg1[%c0, %c0_0] : memref<4x32xf32, #tpu.memory_space<vmem>>, vector<4x32xf32>
    %1 = arith.truncf %0 : vector<4x32xf32> to vector<4x32xbf16>
    %cst = arith.constant 0.000000e+00 : bf16
    %2 = vector.broadcast %cst : bf16 to vector<4x2xbf16>
    %3 = vector.extract_strided_slice %1 {offsets = [0, 0], sizes = [4, 30], strides = [1, 1]} : vector<4x32xbf16> to vector<4x30xbf16>
    %4 = tpu.concatenate %2, %3 in 1 : vector<4x2xbf16>, vector<4x30xbf16> -> vector<4x32xbf16>
    %c0_1 = arith.constant 0 : index
    %c0_2 = arith.constant 0 : index
    %5 = vector.load %arg2[%c0_1, %c0_2] : memref<1x32xi32, #tpu.memory_space<vmem>>, vector<1x32xi32>
    %c2_i32 = arith.constant 2 : i32
    %6 = vector.broadcast %c2_i32 : i32 to vector<1x32xi32>
    %7 = arith.cmpi sge, %5, %6 : vector<1x32xi32>
    %cst_3 = arith.constant 0.000000e+00 : bf16
    %8 = vector.broadcast %cst_3 : bf16 to vector<4x32xbf16>
    %9 = vector.shape_cast %7 : vector<1x32xi1> to vector<1x32xi1>
    %10 = vector.broadcast %9 : vector<1x32xi1> to vector<4x32xi1>
    %11 = arith.select %10, %4, %8 : vector<4x32xi1>, vector<4x32xbf16>
    %cst_4 = arith.constant 0.000000e+00 : bf16
    %12 = vector.broadcast %cst_4 : bf16 to vector<4x1xbf16>
    %13 = vector.extract_strided_slice %1 {offsets = [0, 0], sizes = [4, 31], strides = [1, 1]} : vector<4x32xbf16> to vector<4x31xbf16>
    %14 = tpu.concatenate %12, %13 in 1 : vector<4x1xbf16>, vector<4x31xbf16> -> vector<4x32xbf16>
    %c0_5 = arith.constant 0 : index
    %c0_6 = arith.constant 0 : index
    %15 = vector.load %arg2[%c0_5, %c0_6] : memref<1x32xi32, #tpu.memory_space<vmem>>, vector<1x32xi32>
    %c1_i32 = arith.constant 1 : i32
    %16 = vector.broadcast %c1_i32 : i32 to vector<1x32xi32>
    %17 = arith.cmpi sge, %15, %16 : vector<1x32xi32>
    %cst_7 = arith.constant 0.000000e+00 : bf16
    %18 = vector.broadcast %cst_7 : bf16 to vector<4x32xbf16>
    %19 = vector.shape_cast %17 : vector<1x32xi1> to vector<1x32xi1>
    %20 = vector.broadcast %19 : vector<1x32xi1> to vector<4x32xi1>
    %21 = arith.select %20, %14, %18 : vector<4x32xi1>, vector<4x32xbf16>
    %22 = tpu.concatenate %11, %21, %1 in 0 : vector<4x32xbf16>, vector<4x32xbf16>, vector<4x32xbf16> -> vector<12x32xbf16>
    %c0_8 = arith.constant 0 : index
    %c0_9 = arith.constant 0 : index
    %23 = vector.load %arg3[%c0_8, %c0_9] : memref<4x12xbf16, #tpu.memory_space<vmem>>, vector<4x12xbf16>
    %cst_10 = arith.constant dense<0.000000e+00> : vector<4x32xf32>
    %24 = tpu.matmul %23, %22, %cst_10 {dimension_numbers = #tpu.dot_dimension_numbers<[1], [0], [0], [1], [0, 0, 1, 1], [], []>} : vector<4x12xbf16>, vector<12x32xbf16>, vector<4x32xf32> -> vector<4x32xf32>
    %c0_11 = arith.constant 0 : index
    %c0_12 = arith.constant 0 : index
    %25 = vector.load %arg4[%c0_11, %c0_12] : memref<4x1xf32, #tpu.memory_space<vmem>>, vector<4x1xf32>
    %26 = vector.broadcast %25 : vector<4x1xf32> to vector<4x32xf32>
    %27 = arith.addf %24, %26 : vector<4x32xf32>
    %cst_13 = arith.constant 0.000000e+00 : f32
    %28 = vector.broadcast %cst_13 : f32 to vector<4x32xf32>
    %29 = arith.maximumf %27, %28 : vector<4x32xf32>
    %c0_14 = arith.constant 0 : index
    %c0_15 = arith.constant 0 : index
    %30 = vector.load %arg5[%c0_14, %c0_15] : memref<4x4xbf16, #tpu.memory_space<vmem>>, vector<4x4xbf16>
    %cst_16 = arith.constant dense<0.000000e+00> : vector<4x32xf32>
    %31 = tpu.matmul %30, %1, %cst_16 {dimension_numbers = #tpu.dot_dimension_numbers<[1], [0], [0], [1], [0, 0, 1, 1], [], []>} : vector<4x4xbf16>, vector<4x32xbf16>, vector<4x32xf32> -> vector<4x32xf32>
    %32 = arith.truncf %31 : vector<4x32xf32> to vector<4x32xbf16>
    %c0_17 = arith.constant 0 : index
    %c0_18 = arith.constant 0 : index
    %33 = vector.load %arg6[%c0_17, %c0_18] : memref<16x16xbf16, #tpu.memory_space<vmem>>, vector<16x16xbf16>
    %c0_19 = arith.constant 0 : index
    %c0_20 = arith.constant 0 : index
    %34 = vector.load %arg7[%c0_19, %c0_20] : memref<4x16xf32, #tpu.memory_space<vmem>>, vector<4x16xf32>
    %35 = vector.extract_strided_slice %32 {offsets = [0, 0], sizes = [4, 16], strides = [1, 1]} : vector<4x32xbf16> to vector<4x16xbf16>
    %cst_21 = arith.constant dense<0.000000e+00> : vector<4x16xf32>
    %36 = tpu.matmul %35, %33, %cst_21 {dimension_numbers = #tpu.dot_dimension_numbers<[1], [0], [0], [1], [0, 0, 1, 1], [], []>} : vector<4x16xbf16>, vector<16x16xbf16>, vector<4x16xf32> -> vector<4x16xf32>
    %37 = arith.addf %36, %34 : vector<4x16xf32>
    %38 = vector.extract_strided_slice %32 {offsets = [0, 16], sizes = [4, 16], strides = [1, 1]} : vector<4x32xbf16> to vector<4x16xbf16>
    %cst_22 = arith.constant dense<0.000000e+00> : vector<4x16xf32>
    %39 = tpu.matmul %38, %33, %cst_22 {dimension_numbers = #tpu.dot_dimension_numbers<[1], [0], [0], [1], [0, 0, 1, 1], [], []>} : vector<4x16xbf16>, vector<16x16xbf16>, vector<4x16xf32> -> vector<4x16xf32>
    %40 = arith.addf %39, %34 : vector<4x16xf32>
    %41 = tpu.concatenate %37, %40 in 1 : vector<4x16xf32>, vector<4x16xf32> -> vector<4x32xf32>
    %cst_23 = arith.constant 0.000000e+00 : f32
    %42 = vector.broadcast %cst_23 : f32 to vector<4x32xf32>
    %43 = arith.maximumf %41, %42 : vector<4x32xf32>
    %44 = arith.addf %0, %29 : vector<4x32xf32>
    %45 = arith.addf %44, %43 : vector<4x32xf32>
    %cst_24 = arith.constant 0.000000e+00 : f32
    %46 = vector.broadcast %cst_24 : f32 to vector<4x32xf32>
    %47 = arith.maximumf %45, %46 : vector<4x32xf32>
    %c0_25 = arith.constant 0 : index
    %c0_26 = arith.constant 0 : index
    %48 = vector.load %arg8[%c0_25, %c0_26] : memref<4x32xf32, #tpu.memory_space<vmem>>, vector<4x32xf32>
    tpu.vector_store %arg8[%c0_25, %c0_26], %47 {strides = array<i32>} : memref<4x32xf32, #tpu.memory_space<vmem>>, vector<4x32xf32>,
    return
  }
  func.func @transform_0(%arg0: i32) -> (i32, i32) {
    %c0_i32 = arith.constant 0 : i32
    %c0_i32_0 = arith.constant 0 : i32
    return %c0_i32, %arg0 : i32, i32
  }
  func.func @transform_1(%arg0: i32) -> (i32, i32) {
    %c0_i32 = arith.constant 0 : i32
    %c0_i32_0 = arith.constant 0 : i32
    %c0_i32_1 = arith.constant 0 : i32
    return %c0_i32, %c0_i32_0 : i32, i32
  }
  func.func @transform_2(%arg0: i32) -> (i32, i32) {
    %c0_i32 = arith.constant 0 : i32
    %c0_i32_0 = arith.constant 0 : i32
    %c0_i32_1 = arith.constant 0 : i32
    return %c0_i32, %c0_i32_0 : i32, i32
  }
  func.func @transform_3(%arg0: i32) -> (i32, i32) {
    %c0_i32 = arith.constant 0 : i32
    %c0_i32_0 = arith.constant 0 : i32
    %c0_i32_1 = arith.constant 0 : i32
    return %c0_i32, %c0_i32_0 : i32, i32
  }
  func.func @transform_4(%arg0: i32) -> (i32, i32) {
    %c0_i32 = arith.constant 0 : i32
    %c0_i32_0 = arith.constant 0 : i32
    %c0_i32_1 = arith.constant 0 : i32
    return %c0_i32, %c0_i32_0 : i32, i32
  }
  func.func @transform_5(%arg0: i32) -> (i32, i32) {
    %c0_i32 = arith.constant 0 : i32
    %c0_i32_0 = arith.constant 0 : i32
    %c0_i32_1 = arith.constant 0 : i32
    return %c0_i32, %c0_i32_0 : i32, i32
  }
  func.func @transform_6(%arg0: i32) -> (i32, i32) {
    %c0_i32 = arith.constant 0 : i32
    %c0_i32_0 = arith.constant 0 : i32
    %c0_i32_1 = arith.constant 0 : i32
    return %c0_i32, %c0_i32_0 : i32, i32
  }
  func.func @transform_7(%arg0: i32) -> (i32, i32) {
    %c0_i32 = arith.constant 0 : i32
    %c0_i32_0 = arith.constant 0 : i32
    return %c0_i32, %arg0 : i32, i32
  }
}

module attributes {stable_mosaic.version = 11 : i64} {
  func.func @_ts_block_kernel(%arg0: i32, %arg1: memref<4x32xf32, #tpu.memory_space<vmem>>, %arg2: memref<1x32xi32, #tpu.memory_space<vmem>>, %arg3: memref<4x12xbf16, #tpu.memory_space<vmem>>, %arg4: memref<4x1xf32, #tpu.memory_space<vmem>>, %arg5: memref<4x4xbf16, #tpu.memory_space<vmem>>, %arg6: memref<16x16xbf16, #tpu.memory_space<vmem>>, %arg7: memref<4x16xf32, #tpu.memory_space<vmem>>, %arg8: memref<4x32xf32, #tpu.memory_space<vmem>>) attributes {dimension_semantics = [#tpu.dimension_semantics<parallel>], iteration_bounds = array<i64: 1>, scalar_prefetch = 0 : i64, scratch_operands = 0 : i64, tpu.core_type = #tpu.core_type<tc>, window_params = [{transform_indices = @transform_0, window_bounds = array<i64: 4, 32>}, {pipeline_mode = #tpu.pipeline_mode<synchronous>, transform_indices = @transform_1, window_bounds = array<i64: 1, 32>}, {pipeline_mode = #tpu.pipeline_mode<synchronous>, transform_indices = @transform_2, window_bounds = array<i64: 4, 12>}, {pipeline_mode = #tpu.pipeline_mode<synchronous>, transform_indices = @transform_3, window_bounds = array<i64: 4, 1>}, {pipeline_mode = #tpu.pipeline_mode<synchronous>, transform_indices = @transform_4, window_bounds = array<i64: 4, 4>}, {pipeline_mode = #tpu.pipeline_mode<synchronous>, transform_indices = @transform_5, window_bounds = array<i64: 16, 16>}, {pipeline_mode = #tpu.pipeline_mode<synchronous>, transform_indices = @transform_6, window_bounds = array<i64: 4, 16>}, {transform_indices = @transform_7, window_bounds = array<i64: 4, 32>}]} {
    %c0 = arith.constant 0 : index
    %c0_0 = arith.constant 0 : index
    %0 = vector.load %arg1[%c0, %c0_0] : memref<4x32xf32, #tpu.memory_space<vmem>>, vector<4x32xf32>
    %1 = arith.truncf %0 : vector<4x32xf32> to vector<4x32xbf16>
    %cst = arith.constant 0.000000e+00 : bf16
    %2 = vector.broadcast %cst : bf16 to vector<4x8xbf16>
    %3 = vector.extract_strided_slice %1 {offsets = [0, 0], sizes = [4, 24], strides = [1, 1]} : vector<4x32xbf16> to vector<4x24xbf16>
    %4 = tpu.concatenate %2, %3 in 1 : vector<4x8xbf16>, vector<4x24xbf16> -> vector<4x32xbf16>
    %c0_1 = arith.constant 0 : index
    %c0_2 = arith.constant 0 : index
    %5 = vector.load %arg2[%c0_1, %c0_2] : memref<1x32xi32, #tpu.memory_space<vmem>>, vector<1x32xi32>
    %c8_i32 = arith.constant 8 : i32
    %6 = vector.broadcast %c8_i32 : i32 to vector<1x32xi32>
    %7 = arith.cmpi sge, %5, %6 : vector<1x32xi32>
    %cst_3 = arith.constant 0.000000e+00 : bf16
    %8 = vector.broadcast %cst_3 : bf16 to vector<4x32xbf16>
    %9 = vector.shape_cast %7 : vector<1x32xi1> to vector<1x32xi1>
    %10 = vector.broadcast %9 : vector<1x32xi1> to vector<4x32xi1>
    %11 = arith.select %10, %4, %8 : vector<4x32xi1>, vector<4x32xbf16>
    %cst_4 = arith.constant 0.000000e+00 : bf16
    %12 = vector.broadcast %cst_4 : bf16 to vector<4x4xbf16>
    %13 = vector.extract_strided_slice %1 {offsets = [0, 0], sizes = [4, 28], strides = [1, 1]} : vector<4x32xbf16> to vector<4x28xbf16>
    %14 = tpu.concatenate %12, %13 in 1 : vector<4x4xbf16>, vector<4x28xbf16> -> vector<4x32xbf16>
    %c0_5 = arith.constant 0 : index
    %c0_6 = arith.constant 0 : index
    %15 = vector.load %arg2[%c0_5, %c0_6] : memref<1x32xi32, #tpu.memory_space<vmem>>, vector<1x32xi32>
    %c4_i32 = arith.constant 4 : i32
    %16 = vector.broadcast %c4_i32 : i32 to vector<1x32xi32>
    %17 = arith.cmpi sge, %15, %16 : vector<1x32xi32>
    %cst_7 = arith.constant 0.000000e+00 : bf16
    %18 = vector.broadcast %cst_7 : bf16 to vector<4x32xbf16>
    %19 = vector.shape_cast %17 : vector<1x32xi1> to vector<1x32xi1>
    %20 = vector.broadcast %19 : vector<1x32xi1> to vector<4x32xi1>
    %21 = arith.select %20, %14, %18 : vector<4x32xi1>, vector<4x32xbf16>
    %22 = tpu.concatenate %11, %21, %1 in 0 : vector<4x32xbf16>, vector<4x32xbf16>, vector<4x32xbf16> -> vector<12x32xbf16>
    %c0_8 = arith.constant 0 : index
    %c0_9 = arith.constant 0 : index
    %23 = vector.load %arg3[%c0_8, %c0_9] : memref<4x12xbf16, #tpu.memory_space<vmem>>, vector<4x12xbf16>
    %cst_10 = arith.constant dense<0.000000e+00> : vector<4x32xf32>
    %24 = tpu.matmul %23, %22, %cst_10 {dimension_numbers = #tpu.dot_dimension_numbers<[1], [0], [0], [1], [0, 0, 1, 1], [], []>} : vector<4x12xbf16>, vector<12x32xbf16>, vector<4x32xf32> -> vector<4x32xf32>
    %c0_11 = arith.constant 0 : index
    %c0_12 = arith.constant 0 : index
    %25 = vector.load %arg4[%c0_11, %c0_12] : memref<4x1xf32, #tpu.memory_space<vmem>>, vector<4x1xf32>
    %26 = vector.broadcast %25 : vector<4x1xf32> to vector<4x32xf32>
    %27 = arith.addf %24, %26 : vector<4x32xf32>
    %cst_13 = arith.constant 0.000000e+00 : f32
    %28 = vector.broadcast %cst_13 : f32 to vector<4x32xf32>
    %29 = arith.maximumf %27, %28 : vector<4x32xf32>
    %c0_14 = arith.constant 0 : index
    %c0_15 = arith.constant 0 : index
    %30 = vector.load %arg5[%c0_14, %c0_15] : memref<4x4xbf16, #tpu.memory_space<vmem>>, vector<4x4xbf16>
    %cst_16 = arith.constant dense<0.000000e+00> : vector<4x32xf32>
    %31 = tpu.matmul %30, %1, %cst_16 {dimension_numbers = #tpu.dot_dimension_numbers<[1], [0], [0], [1], [0, 0, 1, 1], [], []>} : vector<4x4xbf16>, vector<4x32xbf16>, vector<4x32xf32> -> vector<4x32xf32>
    %32 = arith.truncf %31 : vector<4x32xf32> to vector<4x32xbf16>
    %c0_17 = arith.constant 0 : index
    %c0_18 = arith.constant 0 : index
    %33 = vector.load %arg6[%c0_17, %c0_18] : memref<16x16xbf16, #tpu.memory_space<vmem>>, vector<16x16xbf16>
    %c0_19 = arith.constant 0 : index
    %c0_20 = arith.constant 0 : index
    %34 = vector.load %arg7[%c0_19, %c0_20] : memref<4x16xf32, #tpu.memory_space<vmem>>, vector<4x16xf32>
    %35 = vector.extract_strided_slice %32 {offsets = [0, 0], sizes = [4, 16], strides = [1, 1]} : vector<4x32xbf16> to vector<4x16xbf16>
    %cst_21 = arith.constant dense<0.000000e+00> : vector<4x16xf32>
    %36 = tpu.matmul %35, %33, %cst_21 {dimension_numbers = #tpu.dot_dimension_numbers<[1], [0], [0], [1], [0, 0, 1, 1], [], []>} : vector<4x16xbf16>, vector<16x16xbf16>, vector<4x16xf32> -> vector<4x16xf32>
    %37 = arith.addf %36, %34 : vector<4x16xf32>
    %38 = vector.extract_strided_slice %32 {offsets = [0, 16], sizes = [4, 16], strides = [1, 1]} : vector<4x32xbf16> to vector<4x16xbf16>
    %cst_22 = arith.constant dense<0.000000e+00> : vector<4x16xf32>
    %39 = tpu.matmul %38, %33, %cst_22 {dimension_numbers = #tpu.dot_dimension_numbers<[1], [0], [0], [1], [0, 0, 1, 1], [], []>} : vector<4x16xbf16>, vector<16x16xbf16>, vector<4x16xf32> -> vector<4x16xf32>
    %40 = arith.addf %39, %34 : vector<4x16xf32>
    %41 = tpu.concatenate %37, %40 in 1 : vector<4x16xf32>, vector<4x16xf32> -> vector<4x32xf32>
    %cst_23 = arith.constant 0.000000e+00 : f32
    %42 = vector.broadcast %cst_23 : f32 to vector<4x32xf32>
    %43 = arith.maximumf %41, %42 : vector<4x32xf32>
    %44 = arith.addf %0, %29 : vector<4x32xf32>
    %45 = arith.addf %44, %43 : vector<4x32xf32>
    %cst_24 = arith.constant 0.000000e+00 : f32
    %46 = vector.broadcast %cst_24 : f32 to vector<4x32xf32>
    %47 = arith.maximumf %45, %46 : vector<4x32xf32>
    %c0_25 = arith.constant 0 : index
    %c0_26 = arith.constant 0 : index
    %48 = vector.load %arg8[%c0_25, %c0_26] : memref<4x32xf32, #tpu.memory_space<vmem>>, vector<4x32xf32>
    tpu.vector_store %arg8[%c0_25, %c0_26], %47 {strides = array<i32>} : memref<4x32xf32, #tpu.memory_space<vmem>>, vector<4x32xf32>,
    return
  }
  func.func @transform_0(%arg0: i32) -> (i32, i32) {
    %c0_i32 = arith.constant 0 : i32
    %c0_i32_0 = arith.constant 0 : i32
    return %c0_i32, %arg0 : i32, i32
  }
  func.func @transform_1(%arg0: i32) -> (i32, i32) {
    %c0_i32 = arith.constant 0 : i32
    %c0_i32_0 = arith.constant 0 : i32
    %c0_i32_1 = arith.constant 0 : i32
    return %c0_i32, %c0_i32_0 : i32, i32
  }
  func.func @transform_2(%arg0: i32) -> (i32, i32) {
    %c0_i32 = arith.constant 0 : i32
    %c0_i32_0 = arith.constant 0 : i32
    %c0_i32_1 = arith.constant 0 : i32
    return %c0_i32, %c0_i32_0 : i32, i32
  }
  func.func @transform_3(%arg0: i32) -> (i32, i32) {
    %c0_i32 = arith.constant 0 : i32
    %c0_i32_0 = arith.constant 0 : i32
    %c0_i32_1 = arith.constant 0 : i32
    return %c0_i32, %c0_i32_0 : i32, i32
  }
  func.func @transform_4(%arg0: i32) -> (i32, i32) {
    %c0_i32 = arith.constant 0 : i32
    %c0_i32_0 = arith.constant 0 : i32
    %c0_i32_1 = arith.constant 0 : i32
    return %c0_i32, %c0_i32_0 : i32, i32
  }
  func.func @transform_5(%arg0: i32) -> (i32, i32) {
    %c0_i32 = arith.constant 0 : i32
    %c0_i32_0 = arith.constant 0 : i32
    %c0_i32_1 = arith.constant 0 : i32
    return %c0_i32, %c0_i32_0 : i32, i32
  }
  func.func @transform_6(%arg0: i32) -> (i32, i32) {
    %c0_i32 = arith.constant 0 : i32
    %c0_i32_0 = arith.constant 0 : i32
    %c0_i32_1 = arith.constant 0 : i32
    return %c0_i32, %c0_i32_0 : i32, i32
  }
  func.func @transform_7(%arg0: i32) -> (i32, i32) {
    %c0_i32 = arith.constant 0 : i32
    %c0_i32_0 = arith.constant 0 : i32
    return %c0_i32, %arg0 : i32, i32
  }
}

module attributes {stable_mosaic.version = 11 : i64} {
  func.func @_ts_block_kernel(%arg0: i32, %arg1: memref<4x32xf32, #tpu.memory_space<vmem>>, %arg2: memref<1x32xi32, #tpu.memory_space<vmem>>, %arg3: memref<4x8xbf16, #tpu.memory_space<vmem>>, %arg4: memref<4x1xf32, #tpu.memory_space<vmem>>, %arg5: memref<4x4xbf16, #tpu.memory_space<vmem>>, %arg6: memref<16x16xbf16, #tpu.memory_space<vmem>>, %arg7: memref<4x16xf32, #tpu.memory_space<vmem>>, %arg8: memref<4x32xf32, #tpu.memory_space<vmem>>) attributes {dimension_semantics = [#tpu.dimension_semantics<parallel>], iteration_bounds = array<i64: 1>, scalar_prefetch = 0 : i64, scratch_operands = 0 : i64, tpu.core_type = #tpu.core_type<tc>, window_params = [{transform_indices = @transform_0, window_bounds = array<i64: 4, 32>}, {pipeline_mode = #tpu.pipeline_mode<synchronous>, transform_indices = @transform_1, window_bounds = array<i64: 1, 32>}, {pipeline_mode = #tpu.pipeline_mode<synchronous>, transform_indices = @transform_2, window_bounds = array<i64: 4, 8>}, {pipeline_mode = #tpu.pipeline_mode<synchronous>, transform_indices = @transform_3, window_bounds = array<i64: 4, 1>}, {pipeline_mode = #tpu.pipeline_mode<synchronous>, transform_indices = @transform_4, window_bounds = array<i64: 4, 4>}, {pipeline_mode = #tpu.pipeline_mode<synchronous>, transform_indices = @transform_5, window_bounds = array<i64: 16, 16>}, {pipeline_mode = #tpu.pipeline_mode<synchronous>, transform_indices = @transform_6, window_bounds = array<i64: 4, 16>}, {transform_indices = @transform_7, window_bounds = array<i64: 4, 32>}]} {
    %c0 = arith.constant 0 : index
    %c0_0 = arith.constant 0 : index
    %0 = vector.load %arg1[%c0, %c0_0] : memref<4x32xf32, #tpu.memory_space<vmem>>, vector<4x32xf32>
    %1 = arith.truncf %0 : vector<4x32xf32> to vector<4x32xbf16>
    %cst = arith.constant 0.000000e+00 : bf16
    %2 = vector.broadcast %cst : bf16 to vector<4x8xbf16>
    %3 = vector.extract_strided_slice %1 {offsets = [0, 0], sizes = [4, 24], strides = [1, 1]} : vector<4x32xbf16> to vector<4x24xbf16>
    %4 = tpu.concatenate %2, %3 in 1 : vector<4x8xbf16>, vector<4x24xbf16> -> vector<4x32xbf16>
    %c0_1 = arith.constant 0 : index
    %c0_2 = arith.constant 0 : index
    %5 = vector.load %arg2[%c0_1, %c0_2] : memref<1x32xi32, #tpu.memory_space<vmem>>, vector<1x32xi32>
    %c8_i32 = arith.constant 8 : i32
    %6 = vector.broadcast %c8_i32 : i32 to vector<1x32xi32>
    %7 = arith.cmpi sge, %5, %6 : vector<1x32xi32>
    %cst_3 = arith.constant 0.000000e+00 : bf16
    %8 = vector.broadcast %cst_3 : bf16 to vector<4x32xbf16>
    %9 = vector.shape_cast %7 : vector<1x32xi1> to vector<1x32xi1>
    %10 = vector.broadcast %9 : vector<1x32xi1> to vector<4x32xi1>
    %11 = arith.select %10, %4, %8 : vector<4x32xi1>, vector<4x32xbf16>
    %12 = tpu.concatenate %11, %1 in 0 : vector<4x32xbf16>, vector<4x32xbf16> -> vector<8x32xbf16>
    %c0_4 = arith.constant 0 : index
    %c0_5 = arith.constant 0 : index
    %13 = vector.load %arg3[%c0_4, %c0_5] : memref<4x8xbf16, #tpu.memory_space<vmem>>, vector<4x8xbf16>
    %cst_6 = arith.constant dense<0.000000e+00> : vector<4x32xf32>
    %14 = tpu.matmul %13, %12, %cst_6 {dimension_numbers = #tpu.dot_dimension_numbers<[1], [0], [0], [1], [0, 0, 1, 1], [], []>} : vector<4x8xbf16>, vector<8x32xbf16>, vector<4x32xf32> -> vector<4x32xf32>
    %c0_7 = arith.constant 0 : index
    %c0_8 = arith.constant 0 : index
    %15 = vector.load %arg4[%c0_7, %c0_8] : memref<4x1xf32, #tpu.memory_space<vmem>>, vector<4x1xf32>
    %16 = vector.broadcast %15 : vector<4x1xf32> to vector<4x32xf32>
    %17 = arith.addf %14, %16 : vector<4x32xf32>
    %cst_9 = arith.constant 0.000000e+00 : f32
    %18 = vector.broadcast %cst_9 : f32 to vector<4x32xf32>
    %19 = arith.maximumf %17, %18 : vector<4x32xf32>
    %c0_10 = arith.constant 0 : index
    %c0_11 = arith.constant 0 : index
    %20 = vector.load %arg5[%c0_10, %c0_11] : memref<4x4xbf16, #tpu.memory_space<vmem>>, vector<4x4xbf16>
    %cst_12 = arith.constant dense<0.000000e+00> : vector<4x32xf32>
    %21 = tpu.matmul %20, %1, %cst_12 {dimension_numbers = #tpu.dot_dimension_numbers<[1], [0], [0], [1], [0, 0, 1, 1], [], []>} : vector<4x4xbf16>, vector<4x32xbf16>, vector<4x32xf32> -> vector<4x32xf32>
    %22 = arith.truncf %21 : vector<4x32xf32> to vector<4x32xbf16>
    %c0_13 = arith.constant 0 : index
    %c0_14 = arith.constant 0 : index
    %23 = vector.load %arg6[%c0_13, %c0_14] : memref<16x16xbf16, #tpu.memory_space<vmem>>, vector<16x16xbf16>
    %c0_15 = arith.constant 0 : index
    %c0_16 = arith.constant 0 : index
    %24 = vector.load %arg7[%c0_15, %c0_16] : memref<4x16xf32, #tpu.memory_space<vmem>>, vector<4x16xf32>
    %25 = vector.extract_strided_slice %22 {offsets = [0, 0], sizes = [4, 16], strides = [1, 1]} : vector<4x32xbf16> to vector<4x16xbf16>
    %cst_17 = arith.constant dense<0.000000e+00> : vector<4x16xf32>
    %26 = tpu.matmul %25, %23, %cst_17 {dimension_numbers = #tpu.dot_dimension_numbers<[1], [0], [0], [1], [0, 0, 1, 1], [], []>} : vector<4x16xbf16>, vector<16x16xbf16>, vector<4x16xf32> -> vector<4x16xf32>
    %27 = arith.addf %26, %24 : vector<4x16xf32>
    %28 = vector.extract_strided_slice %22 {offsets = [0, 16], sizes = [4, 16], strides = [1, 1]} : vector<4x32xbf16> to vector<4x16xbf16>
    %cst_18 = arith.constant dense<0.000000e+00> : vector<4x16xf32>
    %29 = tpu.matmul %28, %23, %cst_18 {dimension_numbers = #tpu.dot_dimension_numbers<[1], [0], [0], [1], [0, 0, 1, 1], [], []>} : vector<4x16xbf16>, vector<16x16xbf16>, vector<4x16xf32> -> vector<4x16xf32>
    %30 = arith.addf %29, %24 : vector<4x16xf32>
    %31 = tpu.concatenate %27, %30 in 1 : vector<4x16xf32>, vector<4x16xf32> -> vector<4x32xf32>
    %cst_19 = arith.constant 0.000000e+00 : f32
    %32 = vector.broadcast %cst_19 : f32 to vector<4x32xf32>
    %33 = arith.maximumf %31, %32 : vector<4x32xf32>
    %34 = arith.addf %0, %19 : vector<4x32xf32>
    %35 = arith.addf %34, %33 : vector<4x32xf32>
    %cst_20 = arith.constant 0.000000e+00 : f32
    %36 = vector.broadcast %cst_20 : f32 to vector<4x32xf32>
    %37 = arith.maximumf %35, %36 : vector<4x32xf32>
    %c0_21 = arith.constant 0 : index
    %c0_22 = arith.constant 0 : index
    %38 = vector.load %arg8[%c0_21, %c0_22] : memref<4x32xf32, #tpu.memory_space<vmem>>, vector<4x32xf32>
    tpu.vector_store %arg8[%c0_21, %c0_22], %37 {strides = array<i32>} : memref<4x32xf32, #tpu.memory_space<vmem>>, vector<4x32xf32>,
    return
  }
  func.func @transform_0(%arg0: i32) -> (i32, i32) {
    %c0_i32 = arith.constant 0 : i32
    %c0_i32_0 = arith.constant 0 : i32
    return %c0_i32, %arg0 : i32, i32
  }
  func.func @transform_1(%arg0: i32) -> (i32, i32) {
    %c0_i32 = arith.constant 0 : i32
    %c0_i32_0 = arith.constant 0 : i32
    %c0_i32_1 = arith.constant 0 : i32
    return %c0_i32, %c0_i32_0 : i32, i32
  }
  func.func @transform_2(%arg0: i32) -> (i32, i32) {
    %c0_i32 = arith.constant 0 : i32
    %c0_i32_0 = arith.constant 0 : i32
    %c0_i32_1 = arith.constant 0 : i32
    return %c0_i32, %c0_i32_0 : i32, i32
  }
  func.func @transform_3(%arg0: i32) -> (i32, i32) {
    %c0_i32 = arith.constant 0 : i32
    %c0_i32_0 = arith.constant 0 : i32
    %c0_i32_1 = arith.constant 0 : i32
    return %c0_i32, %c0_i32_0 : i32, i32
  }
  func.func @transform_4(%arg0: i32) -> (i32, i32) {
    %c0_i32 = arith.constant 0 : i32
    %c0_i32_0 = arith.constant 0 : i32
    %c0_i32_1 = arith.constant 0 : i32
    return %c0_i32, %c0_i32_0 : i32, i32
  }
  func.func @transform_5(%arg0: i32) -> (i32, i32) {
    %c0_i32 = arith.constant 0 : i32
    %c0_i32_0 = arith.constant 0 : i32
    %c0_i32_1 = arith.constant 0 : i32
    return %c0_i32, %c0_i32_0 : i32, i32
  }
  func.func @transform_6(%arg0: i32) -> (i32, i32) {
    %c0_i32 = arith.constant 0 : i32
    %c0_i32_0 = arith.constant 0 : i32
    %c0_i32_1 = arith.constant 0 : i32
    return %c0_i32, %c0_i32_0 : i32, i32
  }
  func.func @transform_7(%arg0: i32) -> (i32, i32) {
    %c0_i32 = arith.constant 0 : i32
    %c0_i32_0 = arith.constant 0 : i32
    return %c0_i32, %arg0 : i32, i32
  }
}

module attributes {stable_mosaic.version = 11 : i64} {
  func.func @_ts_block_kernel(%arg0: i32, %arg1: memref<4x32xf32, #tpu.memory_space<vmem>>, %arg2: memref<1x32xi32, #tpu.memory_space<vmem>>, %arg3: memref<4x4xbf16, #tpu.memory_space<vmem>>, %arg4: memref<4x1xf32, #tpu.memory_space<vmem>>, %arg5: memref<4x4xbf16, #tpu.memory_space<vmem>>, %arg6: memref<16x16xbf16, #tpu.memory_space<vmem>>, %arg7: memref<4x16xf32, #tpu.memory_space<vmem>>, %arg8: memref<4x32xf32, #tpu.memory_space<vmem>>) attributes {dimension_semantics = [#tpu.dimension_semantics<parallel>], iteration_bounds = array<i64: 1>, scalar_prefetch = 0 : i64, scratch_operands = 0 : i64, tpu.core_type = #tpu.core_type<tc>, window_params = [{transform_indices = @transform_0, window_bounds = array<i64: 4, 32>}, {pipeline_mode = #tpu.pipeline_mode<synchronous>, transform_indices = @transform_1, window_bounds = array<i64: 1, 32>}, {pipeline_mode = #tpu.pipeline_mode<synchronous>, transform_indices = @transform_2, window_bounds = array<i64: 4, 4>}, {pipeline_mode = #tpu.pipeline_mode<synchronous>, transform_indices = @transform_3, window_bounds = array<i64: 4, 1>}, {pipeline_mode = #tpu.pipeline_mode<synchronous>, transform_indices = @transform_4, window_bounds = array<i64: 4, 4>}, {pipeline_mode = #tpu.pipeline_mode<synchronous>, transform_indices = @transform_5, window_bounds = array<i64: 16, 16>}, {pipeline_mode = #tpu.pipeline_mode<synchronous>, transform_indices = @transform_6, window_bounds = array<i64: 4, 16>}, {transform_indices = @transform_7, window_bounds = array<i64: 4, 32>}]} {
    %c0 = arith.constant 0 : index
    %c0_0 = arith.constant 0 : index
    %0 = vector.load %arg1[%c0, %c0_0] : memref<4x32xf32, #tpu.memory_space<vmem>>, vector<4x32xf32>
    %1 = arith.truncf %0 : vector<4x32xf32> to vector<4x32xbf16>
    %c0_1 = arith.constant 0 : index
    %c0_2 = arith.constant 0 : index
    %2 = vector.load %arg3[%c0_1, %c0_2] : memref<4x4xbf16, #tpu.memory_space<vmem>>, vector<4x4xbf16>
    %cst = arith.constant dense<0.000000e+00> : vector<4x32xf32>
    %3 = tpu.matmul %2, %1, %cst {dimension_numbers = #tpu.dot_dimension_numbers<[1], [0], [0], [1], [0, 0, 1, 1], [], []>} : vector<4x4xbf16>, vector<4x32xbf16>, vector<4x32xf32> -> vector<4x32xf32>
    %c0_3 = arith.constant 0 : index
    %c0_4 = arith.constant 0 : index
    %4 = vector.load %arg4[%c0_3, %c0_4] : memref<4x1xf32, #tpu.memory_space<vmem>>, vector<4x1xf32>
    %5 = vector.broadcast %4 : vector<4x1xf32> to vector<4x32xf32>
    %6 = arith.addf %3, %5 : vector<4x32xf32>
    %cst_5 = arith.constant 0.000000e+00 : f32
    %7 = vector.broadcast %cst_5 : f32 to vector<4x32xf32>
    %8 = arith.maximumf %6, %7 : vector<4x32xf32>
    %c0_6 = arith.constant 0 : index
    %c0_7 = arith.constant 0 : index
    %9 = vector.load %arg5[%c0_6, %c0_7] : memref<4x4xbf16, #tpu.memory_space<vmem>>, vector<4x4xbf16>
    %cst_8 = arith.constant dense<0.000000e+00> : vector<4x32xf32>
    %10 = tpu.matmul %9, %1, %cst_8 {dimension_numbers = #tpu.dot_dimension_numbers<[1], [0], [0], [1], [0, 0, 1, 1], [], []>} : vector<4x4xbf16>, vector<4x32xbf16>, vector<4x32xf32> -> vector<4x32xf32>
    %11 = arith.truncf %10 : vector<4x32xf32> to vector<4x32xbf16>
    %c0_9 = arith.constant 0 : index
    %c0_10 = arith.constant 0 : index
    %12 = vector.load %arg6[%c0_9, %c0_10] : memref<16x16xbf16, #tpu.memory_space<vmem>>, vector<16x16xbf16>
    %c0_11 = arith.constant 0 : index
    %c0_12 = arith.constant 0 : index
    %13 = vector.load %arg7[%c0_11, %c0_12] : memref<4x16xf32, #tpu.memory_space<vmem>>, vector<4x16xf32>
    %14 = vector.extract_strided_slice %11 {offsets = [0, 0], sizes = [4, 16], strides = [1, 1]} : vector<4x32xbf16> to vector<4x16xbf16>
    %cst_13 = arith.constant dense<0.000000e+00> : vector<4x16xf32>
    %15 = tpu.matmul %14, %12, %cst_13 {dimension_numbers = #tpu.dot_dimension_numbers<[1], [0], [0], [1], [0, 0, 1, 1], [], []>} : vector<4x16xbf16>, vector<16x16xbf16>, vector<4x16xf32> -> vector<4x16xf32>
    %16 = arith.addf %15, %13 : vector<4x16xf32>
    %17 = vector.extract_strided_slice %11 {offsets = [0, 16], sizes = [4, 16], strides = [1, 1]} : vector<4x32xbf16> to vector<4x16xbf16>
    %cst_14 = arith.constant dense<0.000000e+00> : vector<4x16xf32>
    %18 = tpu.matmul %17, %12, %cst_14 {dimension_numbers = #tpu.dot_dimension_numbers<[1], [0], [0], [1], [0, 0, 1, 1], [], []>} : vector<4x16xbf16>, vector<16x16xbf16>, vector<4x16xf32> -> vector<4x16xf32>
    %19 = arith.addf %18, %13 : vector<4x16xf32>
    %20 = tpu.concatenate %16, %19 in 1 : vector<4x16xf32>, vector<4x16xf32> -> vector<4x32xf32>
    %cst_15 = arith.constant 0.000000e+00 : f32
    %21 = vector.broadcast %cst_15 : f32 to vector<4x32xf32>
    %22 = arith.maximumf %20, %21 : vector<4x32xf32>
    %23 = arith.addf %0, %8 : vector<4x32xf32>
    %24 = arith.addf %23, %22 : vector<4x32xf32>
    %cst_16 = arith.constant 0.000000e+00 : f32
    %25 = vector.broadcast %cst_16 : f32 to vector<4x32xf32>
    %26 = arith.maximumf %24, %25 : vector<4x32xf32>
    %c0_17 = arith.constant 0 : index
    %c0_18 = arith.constant 0 : index
    %27 = vector.load %arg8[%c0_17, %c0_18] : memref<4x32xf32, #tpu.memory_space<vmem>>, vector<4x32xf32>
    tpu.vector_store %arg8[%c0_17, %c0_18], %26 {strides = array<i32>} : memref<4x32xf32, #tpu.memory_space<vmem>>, vector<4x32xf32>,
    return
  }
  func.func @transform_0(%arg0: i32) -> (i32, i32) {
    %c0_i32 = arith.constant 0 : i32
    %c0_i32_0 = arith.constant 0 : i32
    return %c0_i32, %arg0 : i32, i32
  }
  func.func @transform_1(%arg0: i32) -> (i32, i32) {
    %c0_i32 = arith.constant 0 : i32
    %c0_i32_0 = arith.constant 0 : i32
    %c0_i32_1 = arith.constant 0 : i32
    return %c0_i32, %c0_i32_0 : i32, i32
  }
  func.func @transform_2(%arg0: i32) -> (i32, i32) {
    %c0_i32 = arith.constant 0 : i32
    %c0_i32_0 = arith.constant 0 : i32
    %c0_i32_1 = arith.constant 0 : i32
    return %c0_i32, %c0_i32_0 : i32, i32
  }
  func.func @transform_3(%arg0: i32) -> (i32, i32) {
    %c0_i32 = arith.constant 0 : i32
    %c0_i32_0 = arith.constant 0 : i32
    %c0_i32_1 = arith.constant 0 : i32
    return %c0_i32, %c0_i32_0 : i32, i32
  }
  func.func @transform_4(%arg0: i32) -> (i32, i32) {
    %c0_i32 = arith.constant 0 : i32
    %c0_i32_0 = arith.constant 0 : i32
    %c0_i32_1 = arith.constant 0 : i32
    return %c0_i32, %c0_i32_0 : i32, i32
  }
  func.func @transform_5(%arg0: i32) -> (i32, i32) {
    %c0_i32 = arith.constant 0 : i32
    %c0_i32_0 = arith.constant 0 : i32
    %c0_i32_1 = arith.constant 0 : i32
    return %c0_i32, %c0_i32_0 : i32, i32
  }
  func.func @transform_6(%arg0: i32) -> (i32, i32) {
    %c0_i32 = arith.constant 0 : i32
    %c0_i32_0 = arith.constant 0 : i32
    %c0_i32_1 = arith.constant 0 : i32
    return %c0_i32, %c0_i32_0 : i32, i32
  }
  func.func @transform_7(%arg0: i32) -> (i32, i32) {
    %c0_i32 = arith.constant 0 : i32
    %c0_i32_0 = arith.constant 0 : i32
    return %c0_i32, %arg0 : i32, i32
  }
}

</mosaic_0001>

<bundles_post_ra>
// kernel: tile.9
= control target key start
LH: loop header
LB: loop body
LE: loop exit
PB: predicated region body
PF: predicated region fallthrough
CT: control target
= control target key end

     0   :  { %vm7_vm0 = vcmask 130048   ;;  %vm13_vm1 = vcmask 261248   ;;  %s39_s0 = inlined_call_operand.vmem [shape: s32[2,16], index: 0, kind: input, shape index: {}]   ;;  %s40_s1 = inlined_call_operand.vmem [shape: s32[1,32], index: 1, kind: output, shape index: {}]  }
   0x1   :  { %v4_v0 = vld [vmem:[%s39_s0] sm:$0x3]  ;;  %s22_s0 = smov 16  }
   0x2   :  { %5 = vst [vmem:[#allocation1] sm:$0x3] %v4_v0 }
   0x9   :  { %v10_v1 = vld [vmem:[#allocation1 + $0x1] sm:$0x1]   ;;  %v6_v2 = vld [vmem:[#allocation1] sm:$0x1]  }
   0xa   :  { %11 = vrot.lane.b32.xlu0 %v10_v1, %s22_s0  ;;  %8 = vst.msk [vmem:[#allocation0] sm:$0x1] %vm7_vm0, %v6_v2  }
  0x7c   :  { %v12_v3 = vpop.permute.xlu0 %11  }
  0x7d   :  { %14 = vst.msk [vmem:[#allocation0] sm:$0x1] %vm13_vm1, %v12_v3  }
  0x84   :  { %v17_v4 = vld [vmem:[#allocation0] sm:$0x1] }
  0x85   :  { %20 = vst [vmem:[%s40_s1] sm:$0x1] %v17_v4 }

// kernel: _lambda_.5
= control target key start
LH: loop header
LB: loop body
LE: loop exit
PB: predicated region body
PF: predicated region fallthrough
CT: control target
= control target key end

     0   :  { %vm60_vm0 = vcmask 1041408   ;;  %vm96_vm1 = vcmask 31744   ;;  %vm126_vm2 = vcmask 130048   ;;  %s197_s30 = smov 1   ;;  %v198_v13 = vmov 0   ;;  %s199_s13 = smov 16   ;;  %s274_s0 = inlined_call_operand.vmem [shape: f32[4,32], index: 0, kind: input, shape index: {}, may-alias: {0,7}]   ;;  %s275_s4 = inlined_call_operand.vmem [shape: bf16[4,4], index: 4, kind: input, shape index: {}]   ;;  %s276_s5 = inlined_call_operand.vmem [shape: bf16[16,16], index: 5, kind: input, shape index: {}]   ;;  %s277_s1 = inlined_call_operand.vmem [shape: s32[1,32], index: 1, kind: input, shape index: {}]   ;;  %s278_s3 = inlined_call_operand.vmem [shape: f32[4,1], index: 3, kind: input, shape index: {}]   ;;  %s279_s2 = inlined_call_operand.vmem [shape: bf16[4,12], index: 2, kind: input, shape index: {}]   ;;  %s280_s6 = inlined_call_operand.vmem [shape: f32[4,16], index: 6, kind: input, shape index: {}]   ;;  %s281_s7 = inlined_call_operand.vmem [shape: f32[4,32], index: 7, kind: output, shape index: {}, may-alias: {0,7}]  }
   0x1   :  { %v243_v0 = vld [vmem:[%s274_s0] sm:$0xf]  ;;  %s195_s0 = smov 2   ;;  %193 = vset.pattern.permute.xlu1 %v198_v13  ;;  %194 = vset.pattern.permute.xlu0 %v198_v13  ;;  %vm34_vm6 = vcmask 15360   ;;  %vm48_vm8 = vcmask 7168   ;;  %vm64_vm11 = vcmask 1043456  }
   0x2   :  { %v28_v1 = vpack.c.bf16 %v243_v0, %v243_v0  ;;  %v95_v3 = vld [vmem:[%s275_s4] sm:$0x3]  ;;  %s196_s4 = smov 112   ;;  %vm78_vm12 = vcmask 1045504   ;;  %vm74_vm13 = vcmask 97280   ;;  %vm173_vm14 = vcmask 257024  }
   0x3   :  { %v187_v4 = vld [vmem:[%s276_s5] sm:$0xff] }
   0x4   :  { %v101_v2 = vsel %vm60_vm0, %v28_v1, 0  ;;  %137 = vmatpush.bf16.msra.mxu2 %v187_v4  ;;  %158 = vmatpush.bf16.msra.mxu3 %v187_v4  ;;  %v30_v5 = vunpack.c.l.b16 %v28_v1  ;;  %v39_v12 = vld [vmem:[%s277_s1] sm:$0x1] }
   0x5   :  { %110 = vmatpush.bf16.msra.mxu1 %v101_v2  ;;  %v68_v14 = vld [vmem:[%s278_s3] sm:$0xf]  ;;  %vm52_vm3 = vcmp.ge.s32.totalorder %v39_v12, 1  ;;  %vm40_vm4 = vcmp.ge.s32.totalorder %v39_v12, 2 }
   0x6   :  { %v31_v6 = vpack.c.b16 %v30_v5, %v30_v5  ;;  %v53_v15 = vsel %vm52_vm3, 1, %v198_v13  ;;  %v41_v16 = vsel %vm40_vm4, 1, %v198_v13  ;;  %v67_v31 = vld [vmem:[%s279_s2] sm:$0x3] }
   0x7   :  { %v54_v17 = vperm.slane %v53_v15, 0  ;;  %v42_v19 = vperm.slane %v41_v16, 0  ;;  %v119_v33 = vld [vmem:[%s280_s6] sm:$0xf] }
   0x8   :  { %180 = vmatmul.msk.bf16.vlgmr.msra.gmra.mxu1 %vm96_vm1, %v95_v3  ;;  %32 = vrot.lane.b32.xlu1 %v31_v6, %s195_s0 }
   0x9   :  { %vm55_vm5 = vcmp.eq.s32.totalorder %v54_v17, 1  ;;  %vm43_vm7 = vcmp.eq.s32.totalorder %v42_v19, 1 }
   0xa   :  { %vm56_vm9 = vmpackc.low %vm55_vm5, %vm55_vm5 }
   0xb   :  { %vm44_vm10 = vmpackc.low %vm43_vm7, %vm43_vm7 }
  0x10   :  { %71 = vperm.xlu1 %193, %v68_v14  }
  0x7a   :  { %v33_v20 = vpop.permute.xlu1 %32 }
  0x7b   :  { %v37_v21 = vsel %vm34_vm6, 0, %v33_v20 }
  0x7c   :  { %v45_v25 = vsel %vm44_vm10, %v37_v21, 0 }
  0x82   :  { %v72_v39 = vpop.permute.xlu1 %71 }
  0x85   :  { %v112_v7 = vpop.f32.mrf.mxu1 }
  0x86   :  { %v116_v8 = vpack.c.bf16 %v112_v7, %v112_v7 }
  0x88   :  { %185 = vmatmul.msk.bf16.vlgmr.msra.gmra.mxu2 %vm126_vm2, %v116_v8  ;;  %v144_v9 = vunpack.c.l.b16 %v116_v8 }
  0x8a   :  { %v145_v10 = vpack.c.b16 %v144_v9, %v144_v9 }
  0x8c   :  { %146 = vrot.lane.b32.xlu0 %v145_v10, %s196_s4 }
  0x8d   :  { %v114_v11 = vpop.f32.mrf.mxu1 }
  0x94   :  { %46 = vrot.lane.b32.xlu0 %v31_v6, %s197_s30 }
  0xfe   :  { %v147_v18 = vpop.permute.xlu0 %146 }
  0xff   :  { %186 = vmatmul.msk.bf16.vlgmr.msra.gmra.mxu3 %vm126_vm2, %v147_v18 }
 0x106   :  { %v47_v22 = vpop.permute.xlu0 %46 }
 0x107   :  { %v50_v23 = vsel %vm48_vm8, 0, %v47_v22 }
 0x108   :  { %v57_v24 = vsel %vm56_vm9, %v50_v23, 0 }
 0x109   :  { %v59_v26 = vrot.slane %v57_v24, 6 }
 0x10b   :  { %v139_v27 = vpop.f32.mrf.mxu2  ;;  %v63_v28 = vsel %vm60_vm0, %v45_v25, %v59_v26 }
 0x10c   :  { %v66_v29 = vsel %vm64_vm11, %v63_v28, %v31_v6  ;;  %v140_v42 = vadd.f32 %v139_v27, %v119_v33 }
 0x10d   :  { %v79_v30 = vsel %vm78_vm12, %v66_v29, 0 }
 0x10e   :  { %88 = vmatpush.bf16.msra.mxu0 %v79_v30 }
 0x111   :  { %179 = vmatmul.msk.bf16.vlgmr.msra.gmra.mxu0 %vm74_vm13, %v67_v31 }
 0x113   :  { %v141_v32 = vpop.f32.mrf.mxu2 }
 0x182   :  { %v160_v34 = vpop.f32.mrf.mxu3 }
 0x183   :  { %v161_v35 = vadd.f32 %v160_v34, %v119_v33 }
 0x185   :  { %165 = vrot.lane.b32.xlu2 %v161_v35, %s199_s13 }
 0x18a   :  { %v162_v36 = vpop.f32.mrf.mxu3 }
 0x18e   :  { %v90_v37 = vpop.f32.mrf.mxu0 }
 0x18f   :  { %v91_v40 = vadd.f32 %v90_v37, %v72_v39 }
 0x191   :  { %v94_v41 = vmax.f32 %v91_v40, 0.0 }
 0x193   :  { %v170_v43 = vadd.f32 %v94_v41, %v243_v0 }
 0x196   :  { %v92_v38 = vpop.f32.mrf.mxu0 }
 0x1df   :  { %v166_v44 = vpop.permute.xlu2 %165 }
 0x1e0   :  { %v168_v45 = vsel %vm126_vm2, %v140_v42, %v166_v44 }
 0x1e1   :  { %v169_v46 = vmax.f32 %v168_v45, 0.0 }
 0x1e3   :  { %v171_v47 = vadd.f32 %v170_v43, %v169_v46 }
 0x1e5   :  { %v172_v48 = vmax.f32 %v171_v47, 0.0 }
 0x1e7   :  { %174 = vst.msk [vmem:[%s281_s7] sm:$0xf] %vm173_vm14, %v172_v48 }

// kernel: _lambda_.7
= control target key start
LH: loop header
LB: loop body
LE: loop exit
PB: predicated region body
PF: predicated region fallthrough
CT: control target
= control target key end

     0   :  { %vm60_vm0 = vcmask 1041408   ;;  %vm48_vm1 = vcmask 31744   ;;  %vm125_vm2 = vcmask 130048   ;;  %s196_s30 = smov 4   ;;  %v197_v13 = vmov 0   ;;  %s198_s13 = smov 16   ;;  %s275_s0 = inlined_call_operand.vmem [shape: f32[4,32], index: 0, kind: input, shape index: {}, may-alias: {0,7}]   ;;  %s276_s4 = inlined_call_operand.vmem [shape: bf16[4,4], index: 4, kind: input, shape index: {}]   ;;  %s277_s5 = inlined_call_operand.vmem [shape: bf16[16,16], index: 5, kind: input, shape index: {}]   ;;  %s278_s1 = inlined_call_operand.vmem [shape: s32[1,32], index: 1, kind: input, shape index: {}]   ;;  %s279_s3 = inlined_call_operand.vmem [shape: f32[4,1], index: 3, kind: input, shape index: {}]   ;;  %s280_s2 = inlined_call_operand.vmem [shape: bf16[4,12], index: 2, kind: input, shape index: {}]   ;;  %s281_s6 = inlined_call_operand.vmem [shape: f32[4,16], index: 6, kind: input, shape index: {}]   ;;  %s282_s7 = inlined_call_operand.vmem [shape: f32[4,32], index: 7, kind: output, shape index: {}, may-alias: {0,7}]  }
   0x1   :  { %v242_v0 = vld [vmem:[%s275_s0] sm:$0xf]  ;;  %s194_s0 = smov 8   ;;  %192 = vset.pattern.permute.xlu1 %v197_v13  ;;  %193 = vset.pattern.permute.xlu0 %v197_v13  ;;  %vm34_vm6 = vcmask 64512   ;;  %vm64_vm10 = vcmask 1043456   ;;  %vm78_vm11 = vcmask 1045504  }
   0x2   :  { %v28_v1 = vpack.c.bf16 %v242_v0, %v242_v0  ;;  %v95_v3 = vld [vmem:[%s276_s4] sm:$0x3]  ;;  %s195_s4 = smov 112   ;;  %vm74_vm12 = vcmask 97280   ;;  %vm172_vm13 = vcmask 257024  }
   0x3   :  { %v186_v4 = vld [vmem:[%s277_s5] sm:$0xff] }
   0x4   :  { %v100_v2 = vsel %vm60_vm0, %v28_v1, 0  ;;  %136 = vmatpush.bf16.msra.mxu2 %v186_v4  ;;  %157 = vmatpush.bf16.msra.mxu3 %v186_v4  ;;  %v30_v5 = vunpack.c.l.b16 %v28_v1  ;;  %v39_v12 = vld [vmem:[%s278_s1] sm:$0x1] }
   0x5   :  { %109 = vmatpush.bf16.msra.mxu1 %v100_v2  ;;  %v68_v14 = vld [vmem:[%s279_s3] sm:$0xf]  ;;  %vm52_vm3 = vcmp.ge.s32.totalorder %v39_v12, 4  ;;  %vm40_vm4 = vcmp.ge.s32.totalorder %v39_v12, 8 }
   0x6   :  { %v31_v6 = vpack.c.b16 %v30_v5, %v30_v5  ;;  %v53_v15 = vsel %vm52_vm3, 1, %v197_v13  ;;  %v41_v16 = vsel %vm40_vm4, 1, %v197_v13  ;;  %v67_v31 = vld [vmem:[%s280_s2] sm:$0x3] }
   0x7   :  { %v54_v17 = vperm.slane %v53_v15, 0  ;;  %v42_v19 = vperm.slane %v41_v16, 0  ;;  %v118_v33 = vld [vmem:[%s281_s6] sm:$0xf] }
   0x8   :  { %179 = vmatmul.msk.bf16.vlgmr.msra.gmra.mxu1 %vm48_vm1, %v95_v3  ;;  %32 = vrot.lane.b32.xlu1 %v31_v6, %s194_s0 }
   0x9   :  { %vm55_vm5 = vcmp.eq.s32.totalorder %v54_v17, 1  ;;  %vm43_vm7 = vcmp.eq.s32.totalorder %v42_v19, 1 }
   0xa   :  { %vm56_vm8 = vmpackc.low %vm55_vm5, %vm55_vm5 }
   0xb   :  { %vm44_vm9 = vmpackc.low %vm43_vm7, %vm43_vm7 }
  0x10   :  { %71 = vperm.xlu1 %192, %v68_v14  }
  0x7a   :  { %v33_v20 = vpop.permute.xlu1 %32 }
  0x7b   :  { %v37_v21 = vsel %vm34_vm6, 0, %v33_v20 }
  0x7c   :  { %v45_v25 = vsel %vm44_vm9, %v37_v21, 0 }
  0x82   :  { %v72_v39 = vpop.permute.xlu1 %71 }
  0x85   :  { %v111_v7 = vpop.f32.mrf.mxu1 }
  0x86   :  { %v115_v8 = vpack.c.bf16 %v111_v7, %v111_v7 }
  0x88   :  { %184 = vmatmul.msk.bf16.vlgmr.msra.gmra.mxu2 %vm125_vm2, %v115_v8  ;;  %v143_v9 = vunpack.c.l.b16 %v115_v8 }
  0x8a   :  { %v144_v10 = vpack.c.b16 %v143_v9, %v143_v9 }
  0x8c   :  { %145 = vrot.lane.b32.xlu0 %v144_v10, %s195_s4 }
  0x8d   :  { %v113_v11 = vpop.f32.mrf.mxu1 }
  0x94   :  { %46 = vrot.lane.b32.xlu0 %v31_v6, %s196_s30 }
  0xfe   :  { %v146_v18 = vpop.permute.xlu0 %145 }
  0xff   :  { %185 = vmatmul.msk.bf16.vlgmr.msra.gmra.mxu3 %vm125_vm2, %v146_v18 }
 0x106   :  { %v47_v22 = vpop.permute.xlu0 %46 }
 0x107   :  { %v50_v23 = vsel %vm48_vm1, 0, %v47_v22 }
 0x108   :  { %v57_v24 = vsel %vm56_vm8, %v50_v23, 0 }
 0x109   :  { %v59_v26 = vrot.slane %v57_v24, 6 }
 0x10b   :  { %v138_v27 = vpop.f32.mrf.mxu2  ;;  %v63_v28 = vsel %vm60_vm0, %v45_v25, %v59_v26 }
 0x10c   :  { %v66_v29 = vsel %vm64_vm10, %v63_v28, %v31_v6  ;;  %v139_v42 = vadd.f32 %v138_v27, %v118_v33 }
 0x10d   :  { %v79_v30 = vsel %vm78_vm11, %v66_v29, 0 }
 0x10e   :  { %88 = vmatpush.bf16.msra.mxu0 %v79_v30 }
 0x111   :  { %178 = vmatmul.msk.bf16.vlgmr.msra.gmra.mxu0 %vm74_vm12, %v67_v31 }
 0x113   :  { %v140_v32 = vpop.f32.mrf.mxu2 }
 0x182   :  { %v159_v34 = vpop.f32.mrf.mxu3 }
 0x183   :  { %v160_v35 = vadd.f32 %v159_v34, %v118_v33 }
 0x185   :  { %164 = vrot.lane.b32.xlu2 %v160_v35, %s198_s13 }
 0x18a   :  { %v161_v36 = vpop.f32.mrf.mxu3 }
 0x18e   :  { %v90_v37 = vpop.f32.mrf.mxu0 }
 0x18f   :  { %v91_v40 = vadd.f32 %v90_v37, %v72_v39 }
 0x191   :  { %v94_v41 = vmax.f32 %v91_v40, 0.0 }
 0x193   :  { %v169_v43 = vadd.f32 %v94_v41, %v242_v0 }
 0x196   :  { %v92_v38 = vpop.f32.mrf.mxu0 }
 0x1df   :  { %v165_v44 = vpop.permute.xlu2 %164 }
 0x1e0   :  { %v167_v45 = vsel %vm125_vm2, %v139_v42, %v165_v44 }
 0x1e1   :  { %v168_v46 = vmax.f32 %v167_v45, 0.0 }
 0x1e3   :  { %v170_v47 = vadd.f32 %v169_v43, %v168_v46 }
 0x1e5   :  { %v171_v48 = vmax.f32 %v170_v47, 0.0 }
 0x1e7   :  { %173 = vst.msk [vmem:[%s282_s7] sm:$0xf] %vm172_vm13, %v171_v48 }

// kernel: _lambda_.6
= control target key start
LH: loop header
LB: loop body
LE: loop exit
PB: predicated region body
PF: predicated region fallthrough
CT: control target
= control target key end

     0   :  { %vm60_vm0 = vcmask 1041408   ;;  %vm34_vm1 = vcmask 31744   ;;  %vm125_vm2 = vcmask 130048   ;;  %s196_s30 = smov 2   ;;  %v197_v13 = vmov 0   ;;  %s198_s13 = smov 16   ;;  %s275_s0 = inlined_call_operand.vmem [shape: f32[4,32], index: 0, kind: input, shape index: {}, may-alias: {0,7}]   ;;  %s276_s4 = inlined_call_operand.vmem [shape: bf16[4,4], index: 4, kind: input, shape index: {}]   ;;  %s277_s5 = inlined_call_operand.vmem [shape: bf16[16,16], index: 5, kind: input, shape index: {}]   ;;  %s278_s1 = inlined_call_operand.vmem [shape: s32[1,32], index: 1, kind: input, shape index: {}]   ;;  %s279_s3 = inlined_call_operand.vmem [shape: f32[4,1], index: 3, kind: input, shape index: {}]   ;;  %s280_s2 = inlined_call_operand.vmem [shape: bf16[4,12], index: 2, kind: input, shape index: {}]   ;;  %s281_s6 = inlined_call_operand.vmem [shape: f32[4,16], index: 6, kind: input, shape index: {}]   ;;  %s282_s7 = inlined_call_operand.vmem [shape: f32[4,32], index: 7, kind: output, shape index: {}, may-alias: {0,7}]  }
   0x1   :  { %v242_v0 = vld [vmem:[%s275_s0] sm:$0xf]  ;;  %s194_s0 = smov 4   ;;  %192 = vset.pattern.permute.xlu1 %v197_v13  ;;  %193 = vset.pattern.permute.xlu0 %v197_v13  ;;  %vm48_vm7 = vcmask 15360   ;;  %vm64_vm10 = vcmask 1043456   ;;  %vm78_vm11 = vcmask 1045504  }
   0x2   :  { %v28_v1 = vpack.c.bf16 %v242_v0, %v242_v0  ;;  %v95_v3 = vld [vmem:[%s276_s4] sm:$0x3]  ;;  %s195_s4 = smov 112   ;;  %vm74_vm12 = vcmask 97280   ;;  %vm172_vm13 = vcmask 257024  }
   0x3   :  { %v186_v4 = vld [vmem:[%s277_s5] sm:$0xff] }
   0x4   :  { %v100_v2 = vsel %vm60_vm0, %v28_v1, 0  ;;  %136 = vmatpush.bf16.msra.mxu2 %v186_v4  ;;  %157 = vmatpush.bf16.msra.mxu3 %v186_v4  ;;  %v30_v5 = vunpack.c.l.b16 %v28_v1  ;;  %v39_v12 = vld [vmem:[%s278_s1] sm:$0x1] }
   0x5   :  { %109 = vmatpush.bf16.msra.mxu1 %v100_v2  ;;  %v68_v14 = vld [vmem:[%s279_s3] sm:$0xf]  ;;  %vm52_vm3 = vcmp.ge.s32.totalorder %v39_v12, 2  ;;  %vm40_vm4 = vcmp.ge.s32.totalorder %v39_v12, 4 }
   0x6   :  { %v31_v6 = vpack.c.b16 %v30_v5, %v30_v5  ;;  %v53_v15 = vsel %vm52_vm3, 1, %v197_v13  ;;  %v41_v16 = vsel %vm40_vm4, 1, %v197_v13  ;;  %v67_v31 = vld [vmem:[%s280_s2] sm:$0x3] }
   0x7   :  { %v54_v17 = vperm.slane %v53_v15, 0  ;;  %v42_v19 = vperm.slane %v41_v16, 0  ;;  %v118_v33 = vld [vmem:[%s281_s6] sm:$0xf] }
   0x8   :  { %179 = vmatmul.msk.bf16.vlgmr.msra.gmra.mxu1 %vm34_vm1, %v95_v3  ;;  %32 = vrot.lane.b32.xlu1 %v31_v6, %s194_s0 }
   0x9   :  { %vm55_vm5 = vcmp.eq.s32.totalorder %v54_v17, 1  ;;  %vm43_vm6 = vcmp.eq.s32.totalorder %v42_v19, 1 }
   0xa   :  { %vm56_vm8 = vmpackc.low %vm55_vm5, %vm55_vm5 }
   0xb   :  { %vm44_vm9 = vmpackc.low %vm43_vm6, %vm43_vm6 }
  0x10   :  { %71 = vperm.xlu1 %192, %v68_v14  }
  0x7a   :  { %v33_v20 = vpop.permute.xlu1 %32 }
  0x7b   :  { %v37_v21 = vsel %vm34_vm1, 0, %v33_v20 }
  0x7c   :  { %v45_v25 = vsel %vm44_vm9, %v37_v21, 0 }
  0x82   :  { %v72_v39 = vpop.permute.xlu1 %71 }
  0x85   :  { %v111_v7 = vpop.f32.mrf.mxu1 }
  0x86   :  { %v115_v8 = vpack.c.bf16 %v111_v7, %v111_v7 }
  0x88   :  { %184 = vmatmul.msk.bf16.vlgmr.msra.gmra.mxu2 %vm125_vm2, %v115_v8  ;;  %v143_v9 = vunpack.c.l.b16 %v115_v8 }
  0x8a   :  { %v144_v10 = vpack.c.b16 %v143_v9, %v143_v9 }
  0x8c   :  { %145 = vrot.lane.b32.xlu0 %v144_v10, %s195_s4 }
  0x8d   :  { %v113_v11 = vpop.f32.mrf.mxu1 }
  0x94   :  { %46 = vrot.lane.b32.xlu0 %v31_v6, %s196_s30 }
  0xfe   :  { %v146_v18 = vpop.permute.xlu0 %145 }
  0xff   :  { %185 = vmatmul.msk.bf16.vlgmr.msra.gmra.mxu3 %vm125_vm2, %v146_v18 }
 0x106   :  { %v47_v22 = vpop.permute.xlu0 %46 }
 0x107   :  { %v50_v23 = vsel %vm48_vm7, 0, %v47_v22 }
 0x108   :  { %v57_v24 = vsel %vm56_vm8, %v50_v23, 0 }
 0x109   :  { %v59_v26 = vrot.slane %v57_v24, 6 }
 0x10b   :  { %v138_v27 = vpop.f32.mrf.mxu2  ;;  %v63_v28 = vsel %vm60_vm0, %v45_v25, %v59_v26 }
 0x10c   :  { %v66_v29 = vsel %vm64_vm10, %v63_v28, %v31_v6  ;;  %v139_v42 = vadd.f32 %v138_v27, %v118_v33 }
 0x10d   :  { %v79_v30 = vsel %vm78_vm11, %v66_v29, 0 }
 0x10e   :  { %88 = vmatpush.bf16.msra.mxu0 %v79_v30 }
 0x111   :  { %178 = vmatmul.msk.bf16.vlgmr.msra.gmra.mxu0 %vm74_vm12, %v67_v31 }
 0x113   :  { %v140_v32 = vpop.f32.mrf.mxu2 }
 0x182   :  { %v159_v34 = vpop.f32.mrf.mxu3 }
 0x183   :  { %v160_v35 = vadd.f32 %v159_v34, %v118_v33 }
 0x185   :  { %164 = vrot.lane.b32.xlu2 %v160_v35, %s198_s13 }
 0x18a   :  { %v161_v36 = vpop.f32.mrf.mxu3 }
 0x18e   :  { %v90_v37 = vpop.f32.mrf.mxu0 }
 0x18f   :  { %v91_v40 = vadd.f32 %v90_v37, %v72_v39 }
 0x191   :  { %v94_v41 = vmax.f32 %v91_v40, 0.0 }
 0x193   :  { %v169_v43 = vadd.f32 %v94_v41, %v242_v0 }
 0x196   :  { %v92_v38 = vpop.f32.mrf.mxu0 }
 0x1df   :  { %v165_v44 = vpop.permute.xlu2 %164 }
 0x1e0   :  { %v167_v45 = vsel %vm125_vm2, %v139_v42, %v165_v44 }
 0x1e1   :  { %v168_v46 = vmax.f32 %v167_v45, 0.0 }
 0x1e3   :  { %v170_v47 = vadd.f32 %v169_v43, %v168_v46 }
 0x1e5   :  { %v171_v48 = vmax.f32 %v170_v47, 0.0 }
 0x1e7   :  { %173 = vst.msk [vmem:[%s282_s7] sm:$0xf] %vm172_vm13, %v171_v48 }

// kernel: _lambda_.8
= control target key start
LH: loop header
LB: loop body
LE: loop exit
PB: predicated region body
PF: predicated region fallthrough
CT: control target
= control target key end

     0   :  { %vm47_vm0 = vcmask 1041408   ;;  %vm79_vm1 = vcmask 31744   ;;  %vm109_vm2 = vcmask 130048   ;;  %v179_v12 = vmov 0   ;;  %s180_s12 = smov 16   ;;  %s255_s0 = inlined_call_operand.vmem [shape: f32[4,32], index: 0, kind: input, shape index: {}, may-alias: {0,7}]   ;;  %s256_s4 = inlined_call_operand.vmem [shape: bf16[4,4], index: 4, kind: input, shape index: {}]   ;;  %s257_s5 = inlined_call_operand.vmem [shape: bf16[16,16], index: 5, kind: input, shape index: {}]   ;;  %s258_s3 = inlined_call_operand.vmem [shape: f32[4,1], index: 3, kind: input, shape index: {}]   ;;  %s259_s1 = inlined_call_operand.vmem [shape: s32[1,32], index: 1, kind: input, shape index: {}]   ;;  %s260_s2 = inlined_call_operand.vmem [shape: bf16[4,8], index: 2, kind: input, shape index: {}]   ;;  %s261_s6 = inlined_call_operand.vmem [shape: f32[4,16], index: 6, kind: input, shape index: {}]   ;;  %s262_s7 = inlined_call_operand.vmem [shape: f32[4,32], index: 7, kind: output, shape index: {}, may-alias: {0,7}]  }
   0x1   :  { %v224_v0 = vld [vmem:[%s255_s0] sm:$0xf]  ;;  %s177_s0 = smov 112   ;;  %175 = vset.pattern.permute.xlu1 %v179_v12  ;;  %176 = vset.pattern.permute.xlu0 %v179_v12  ;;  %vm34_vm5 = vcmask 64512   ;;  %vm61_vm7 = vcmask 1043456   ;;  %vm156_vm8 = vcmask 257024  }
   0x2   :  { %v28_v1 = vpack.c.bf16 %v224_v0, %v224_v0  ;;  %v78_v3 = vld [vmem:[%s256_s4] sm:$0x3]  ;;  %s178_s4 = smov 8  }
   0x3   :  { %v170_v4 = vld [vmem:[%s257_s5] sm:$0xff] }
   0x4   :  { %v84_v2 = vsel %vm47_vm0, %v28_v1, 0  ;;  %120 = vmatpush.bf16.msra.mxu2 %v170_v4  ;;  %141 = vmatpush.bf16.msra.mxu3 %v170_v4  ;;  %v30_v9 = vunpack.c.l.b16 %v28_v1  ;;  %v52_v13 = vld [vmem:[%s258_s3] sm:$0xf] }
   0x5   :  { %93 = vmatpush.bf16.msra.mxu1 %v84_v2  ;;  %v39_v14 = vld [vmem:[%s259_s1] sm:$0x1]  ;;  %55 = vperm.xlu1 %175, %v52_v13  }
   0x6   :  { %v31_v11 = vpack.c.b16 %v30_v9, %v30_v9  ;;  %vm40_vm3 = vcmp.ge.s32.totalorder %v39_v14, 8  ;;  %v51_v25 = vld [vmem:[%s260_s2] sm:$0x3] }
   0x7   :  { %v41_v15 = vsel %vm40_vm3, 1, %v179_v12  ;;  %v102_v27 = vld [vmem:[%s261_s6] sm:$0xf] }
   0x8   :  { %163 = vmatmul.msk.bf16.vlgmr.msra.gmra.mxu1 %vm79_vm1, %v78_v3  ;;  %v42_v17 = vperm.slane %v41_v15, 0  ;;  %v46_v18 = vrot.slane %v31_v11, 6 }
   0xa   :  { %vm43_vm4 = vcmp.eq.s32.totalorder %v42_v17, 1 }
   0xb   :  { %vm44_vm6 = vmpackc.low %vm43_vm4, %vm43_vm4 }
  0x77   :  { %v56_v33 = vpop.permute.xlu1 %55 }
  0x85   :  { %v95_v5 = vpop.f32.mrf.mxu1 }
  0x86   :  { %v99_v6 = vpack.c.bf16 %v95_v5, %v95_v5 }
  0x88   :  { %168 = vmatmul.msk.bf16.vlgmr.msra.gmra.mxu2 %vm109_vm2, %v99_v6  ;;  %v127_v7 = vunpack.c.l.b16 %v99_v6 }
  0x8a   :  { %v128_v8 = vpack.c.b16 %v127_v7, %v127_v7 }
  0x8c   :  { %129 = vrot.lane.b32.xlu0 %v128_v8, %s177_s0 }
  0x8d   :  { %v97_v10 = vpop.f32.mrf.mxu1 }
  0x94   :  { %32 = vrot.lane.b32.xlu0 %v31_v11, %s178_s4 }
  0xfe   :  { %v130_v16 = vpop.permute.xlu0 %129 }
  0xff   :  { %169 = vmatmul.msk.bf16.vlgmr.msra.gmra.mxu3 %vm109_vm2, %v130_v16 }
 0x106   :  { %v33_v19 = vpop.permute.xlu0 %32 }
 0x107   :  { %v37_v20 = vsel %vm34_vm5, 0, %v33_v19 }
 0x108   :  { %v45_v21 = vsel %vm44_vm6, %v37_v20, 0 }
 0x109   :  { %v50_v22 = vsel %vm47_vm0, %v45_v21, %v46_v18 }
 0x10a   :  { %v62_v23 = vsel %vm61_vm7, %v50_v22, 0 }
 0x10b   :  { %v122_v24 = vpop.f32.mrf.mxu2  ;;  %71 = vmatpush.bf16.msra.mxu0 %v62_v23 }
 0x10c   :  { %v123_v36 = vadd.f32 %v122_v24, %v102_v27 }
 0x10e   :  { %162 = vmatmul.msk.bf16.vlgmr.msra.gmra.mxu0 %vm34_vm5, %v51_v25 }
 0x113   :  { %v124_v26 = vpop.f32.mrf.mxu2 }
 0x182   :  { %v143_v28 = vpop.f32.mrf.mxu3 }
 0x183   :  { %v144_v29 = vadd.f32 %v143_v28, %v102_v27 }
 0x185   :  { %148 = vrot.lane.b32.xlu1 %v144_v29, %s180_s12 }
 0x18a   :  { %v145_v30 = vpop.f32.mrf.mxu3 }
 0x18b   :  { %v73_v31 = vpop.f32.mrf.mxu0 }
 0x18c   :  { %v74_v34 = vadd.f32 %v73_v31, %v56_v33 }
 0x18e   :  { %v77_v35 = vmax.f32 %v74_v34, 0.0 }
 0x190   :  { %v153_v39 = vadd.f32 %v77_v35, %v224_v0 }
 0x193   :  { %v75_v32 = vpop.f32.mrf.mxu0 }
 0x1f7   :  { %v149_v37 = vpop.permute.xlu1 %148 }
 0x1f8   :  { %v151_v38 = vsel %vm109_vm2, %v123_v36, %v149_v37 }
 0x1f9   :  { %v152_v40 = vmax.f32 %v151_v38, 0.0 }
 0x1fb   :  { %v154_v41 = vadd.f32 %v153_v39, %v152_v40 }
 0x1fd   :  { %v155_v42 = vmax.f32 %v154_v41, 0.0 }
 0x1ff   :  { %157 = vst.msk [vmem:[%s262_s7] sm:$0xf] %vm156_vm8, %v155_v42 }

// kernel: _lambda_.9
= control target key start
LH: loop header
LB: loop body
LE: loop exit
PB: predicated region body
PF: predicated region fallthrough
CT: control target
= control target key end

     0   :  { %vm40_vm0 = vcmask 1041408   ;;  %vm36_vm1 = vcmask 31744   ;;  %vm85_vm2 = vcmask 130048   ;;  %v152_v12 = vmov 0   ;;  %s220_s0 = inlined_call_operand.vmem [shape: f32[4,32], index: 0, kind: input, shape index: {}, may-alias: {0,7}]   ;;  %s221_s1 = inlined_call_operand.vmem [shape: s32[1,32], index: 1, kind: input, shape index: {}]   ;;  %s222_s4 = inlined_call_operand.vmem [shape: bf16[4,4], index: 4, kind: input, shape index: {}]   ;;  %s223_s5 = inlined_call_operand.vmem [shape: bf16[16,16], index: 5, kind: input, shape index: {}]   ;;  %s224_s2 = inlined_call_operand.vmem [shape: bf16[4,4], index: 2, kind: input, shape index: {}]   ;;  %s225_s3 = inlined_call_operand.vmem [shape: f32[4,1], index: 3, kind: input, shape index: {}]   ;;  %s226_s6 = inlined_call_operand.vmem [shape: f32[4,16], index: 6, kind: input, shape index: {}]   ;;  %s227_s7 = inlined_call_operand.vmem [shape: f32[4,32], index: 7, kind: output, shape index: {}, may-alias: {0,7}]  }
   0x1   :  { %v27_v0 = vld [vmem:[%s220_s0] sm:$0xf]  ;;  %s151_s0 = smov 112   ;;  %150 = vset.pattern.permute.xlu0 %v152_v12  ;;  %vm132_vm3 = vcmask 257024  }
   0x2   :  { %v28_v1 = vpack.c.bf16 %v27_v0, %v27_v0  ;;  %v58_v3 = vld [vmem:[%s222_s4] sm:$0x3] }
   0x3   :  { %v146_v4 = vld [vmem:[%s223_s5] sm:$0xff] }
   0x4   :  { %v42_v2 = vsel %vm40_vm0, %v28_v1, 0  ;;  %96 = vmatpush.bf16.msra.mxu2 %v146_v4  ;;  %117 = vmatpush.bf16.msra.mxu3 %v146_v4  ;;  %v29_v10 = vld [vmem:[%s224_s2] sm:$0x3]  ;;  %s153_s2 = smov 16  }
   0x5   :  { %69 = vmatpush.bf16.msra.mxu1 %v42_v2  ;;  %51 = vmatpush.bf16.msra.mxu0 %v42_v2  ;;  %v30_v11 = vld [vmem:[%s225_s3] sm:$0xf] }
   0x6   :  { %v78_v18 = vld [vmem:[%s226_s6] sm:$0xf] }
   0x8   :  { %139 = vmatmul.msk.bf16.vlgmr.msra.gmra.mxu1 %vm36_vm1, %v58_v3  ;;  %138 = vmatmul.msk.bf16.vlgmr.msra.gmra.mxu0 %vm36_vm1, %v29_v10 }
  0x85   :  { %v71_v5 = vpop.f32.mrf.mxu1  ;;  %v53_v16 = vpop.f32.mrf.mxu0 }
  0x86   :  { %v75_v6 = vpack.c.bf16 %v71_v5, %v71_v5 }
  0x88   :  { %144 = vmatmul.msk.bf16.vlgmr.msra.gmra.mxu2 %vm85_vm2, %v75_v6  ;;  %v103_v7 = vunpack.c.l.b16 %v75_v6 }
  0x8a   :  { %v104_v8 = vpack.c.b16 %v103_v7, %v103_v7 }
  0x8c   :  { %105 = vrot.lane.b32.xlu0 %v104_v8, %s151_s0 }
  0x8d   :  { %v73_v9 = vpop.f32.mrf.mxu1  ;;  %v55_v17 = vpop.f32.mrf.mxu0 }
  0x94   :  { %33 = vperm.xlu0 %150, %v30_v11  }
  0xfe   :  { %v106_v13 = vpop.permute.xlu0 %105 }
  0xff   :  { %145 = vmatmul.msk.bf16.vlgmr.msra.gmra.mxu3 %vm85_vm2, %v106_v13 }
 0x106   :  { %v34_v22 = vpop.permute.xlu0 %33 }
 0x107   :  { %v54_v23 = vadd.f32 %v53_v16, %v34_v22 }
 0x109   :  { %v57_v24 = vmax.f32 %v54_v23, 0.0 }
 0x10b   :  { %v98_v14 = vpop.f32.mrf.mxu2  ;;  %v129_v26 = vadd.f32 %v57_v24, %v27_v0 }
 0x10c   :  { %v99_v25 = vadd.f32 %v98_v14, %v78_v18 }
 0x113   :  { %v100_v15 = vpop.f32.mrf.mxu2 }
 0x182   :  { %v119_v19 = vpop.f32.mrf.mxu3 }
 0x183   :  { %v120_v20 = vadd.f32 %v119_v19, %v78_v18 }
 0x185   :  { %124 = vrot.lane.b32.xlu1 %v120_v20, %s153_s2 }
 0x18a   :  { %v121_v21 = vpop.f32.mrf.mxu3 }
 0x1f7   :  { %v125_v27 = vpop.permute.xlu1 %124 }
 0x1f8   :  { %v127_v28 = vsel %vm85_vm2, %v99_v25, %v125_v27 }
 0x1f9   :  { %v128_v29 = vmax.f32 %v127_v28, 0.0 }
 0x1fb   :  { %v130_v30 = vadd.f32 %v129_v26, %v128_v29 }
 0x1fd   :  { %v131_v31 = vmax.f32 %v130_v30, 0.0 }
 0x1ff   :  { %133 = vst.msk [vmem:[%s227_s7] sm:$0xf] %vm132_vm3, %v131_v31 }

</bundles_post_ra>
